<compile_context>
chip_gen: v6e
topology: v6e:2x2x1
jax: 0.10.0
libtpu: 0.0.40
codegen_flags: <defaults>
</compile_context>

<pallas_src>
import functools

import jax
import jax.numpy as jnp
from jax.experimental import pallas as pl
from jax.experimental.pallas import tpu as pltpu

NN_SIZE = 512
NEG_SLOPE = 0.01  # nn.LeakyReLU default


def _leaky_relu(x):
    # 0 < slope < 1  =>  leaky_relu(x) == max(x, slope * x): mul + max (2 VALU
    # ops) instead of cmp + mul + select (3 ops).
    return jnp.maximum(x, NEG_SLOPE * x)


def _round_up(v, m):
    return ((v + m - 1) // m) * m


def mlp_autoencoder_kernel(x_ref,
                           w1_ref, b1_ref,
                           w2_ref, b2_ref,
                           w3_ref, b3_ref,
                           w4_ref, b4_ref,
                           o_ref):
    # x_ref: [4, bm] lane-dense tile of the feature-major batch.
    xt = x_ref[...].astype(jnp.bfloat16)                                  # [4, bm]

    # layer_1: Linear(4, 512) + LeakyReLU      -- MXU (bf16 in, f32 acc)
    h1 = jnp.dot(w1_ref[...], xt, preferred_element_type=jnp.float32)
    h1 = _leaky_relu(h1 + b1_ref[...])                                    # [512, bm] f32
    h1 = h1.astype(jnp.bfloat16)

    # encoder: Linear(512, 2) + LeakyReLU      -- MXU (rows padded to 8, pads = 0)
    z = jnp.dot(w2_ref[...], h1, preferred_element_type=jnp.float32)
    z = _leaky_relu(z + b2_ref[...])                                      # [8, bm] f32
    z = z.astype(jnp.bfloat16)

    # decoder: Linear(2, 512) + LeakyReLU      -- MXU (K zero-padded 2 -> 8)
    h2 = jnp.dot(w3_ref[...], z, preferred_element_type=jnp.float32)
    h2 = _leaky_relu(h2 + b3_ref[...])                                    # [512, bm] f32
    h2 = h2.astype(jnp.bfloat16)

    # output_layer: Linear(512, 4)             -- MXU. forward() applies no Tanh.
    out = jnp.dot(w4_ref[...], h2, preferred_element_type=jnp.float32)
    out = out + b4_ref[...]                                               # [8, bm] f32
    o_ref[...] = out[0:4, :].astype(o_ref.dtype)                          # [4, bm]


@functools.partial(jax.jit, static_argnames=("bm", "vmem_limit"))
def _mlp_autoencoder_impl(x, params, bm, vmem_limit):
    B = x.shape[0]
    xt = x.T                                              # feature-major [4, B]

    bf16 = jnp.bfloat16
    # One-time (per-jit-call) weight prep: pad the tiny dims to 8 and cast to
    # bf16 so no per-grid-step casts run inside the kernel.  All tiny arrays.
    w1 = params["w1"].astype(bf16)                                        # [512, 4]
    b1 = params["b1"].astype(jnp.float32)                                 # [512, 1]
    w2 = jnp.pad(params["w2"], ((0, 8 - params["w2"].shape[0]), (0, 0))).astype(bf16)   # [8, 512]
    b2 = jnp.pad(params["b2"], ((0, 8 - params["b2"].shape[0]), (0, 0))).astype(jnp.float32)
    w3 = jnp.pad(params["w3"], ((0, 0), (0, 8 - params["w3"].shape[1]))).astype(bf16)   # [512, 8]
    b3 = params["b3"].astype(jnp.float32)                                 # [512, 1]
    w4 = jnp.pad(params["w4"], ((0, 8 - params["w4"].shape[0]), (0, 0))).astype(bf16)   # [8, 512]
    b4 = jnp.pad(params["b4"], ((0, 8 - params["b4"].shape[0]), (0, 0))).astype(jnp.float32)

    whole = lambda a: pl.BlockSpec(a.shape, lambda i: (0, 0))  # fetched once

    grid = (pl.cdiv(B, bm),)                 # ragged last block is masked by Pallas
    grid_spec = pltpu.PrefetchScalarGridSpec(
        num_scalar_prefetch=0,
        grid=grid,
        in_specs=[
            pl.BlockSpec((4, bm), lambda i: (0, i)),   # x tile (lane-dense)
            whole(w1), whole(b1),
            whole(w2), whole(b2),
            whole(w3), whole(b3),
            whole(w4), whole(b4),
        ],
        out_specs=pl.BlockSpec((4, bm), lambda i: (0, i)),  # out tile (lane-dense)
    )

    out_t = pl.pallas_call(
        mlp_autoencoder_kernel,
        out_shape=jax.ShapeDtypeStruct((4, B), x.dtype),
        grid_spec=grid_spec,
        compiler_params=pltpu.CompilerParams(
            dimension_semantics=("parallel",),
            vmem_limit_bytes=vmem_limit),
    )(xt, w1, b1, w2, b2, w3, b3, w4, b4)

    return out_t.T                                        # [B, 4]


def _is_small_vmem_dualcore():
    """True for v7x-class chips (64 MiB VMEM per TC, 2 TensorCores/chip)."""
    try:
        info = pltpu.get_tpu_info()
        vmem = getattr(info, "vmem_capacity_bytes", None)
        if vmem:
            return int(vmem) <= (64 << 20)
    except Exception:
        pass
    try:
        kind = jax.devices()[0].device_kind.lower()
        return ("v7" in kind) or ("7x" in kind)
    except Exception:
        return False


def mlp_autoencoder(x, params, block_m=None):
    """x: [B, 4] (PyTorch batch layout). params: PyTorch-layout weights/biases.
    Returns [B, 4]."""
    B, fin = x.shape
    assert fin == 4

    is_v7 = _is_small_vmem_dualcore()
    if block_m is None:
        # Larger tiles amortize the ~0.35us/grid-step overhead; keep smaller
        # on v7x (64 MiB VMEM).
        block_m = 1024 if is_v7 else 2048

    bm = _round_up(max(128, min(block_m, _round_up(B, 128))), 128)
    if is_v7 and B > 128:
        # Guarantee >= 2 grid steps so the "parallel" axis shards across both
        # TensorCores on v7x.
        bm = max(128, min(bm, _round_up(pl.cdiv(B, 2), 128)))

    # VMEM budget: two f32 dot outputs + two bf16 copies of [512, bm], ~1 MiB
    # of lane-padded params, tiny double-buffered I/O tiles, compiler temps.
    need = 4 * NN_SIZE * bm * 4 + (16 << 20)
    cap = (56 << 20) if is_v7 else (100 << 20)
    vmem_limit = int(min(cap, max(32 << 20, need)))

    return _mlp_autoencoder_impl(x, params, bm, vmem_limit)


def init_params(key, nn_size=NN_SIZE):
    """PyTorch nn.Linear-style init in PyTorch layout:
       weight [out, in] ~ U(-1/sqrt(in), 1/sqrt(in)); bias [out, 1] likewise."""
    def linear(k, fan_in, fan_out):
        kw, kb = jax.random.split(k)
        bound = 1.0 / (fan_in ** 0.5)
        w = jax.random.uniform(kw, (fan_out, fan_in), jnp.float32, -bound, bound)
        b = jax.random.uniform(kb, (fan_out, 1), jnp.float32, -bound, bound)
        return w, b

    k1, k2, k3, k4 = jax.random.split(key, 4)
    w1, b1 = linear(k1, 4, nn_size)
    w2, b2 = linear(k2, nn_size, 2)
    w3, b3 = linear(k3, 2, nn_size)
    w4, b4 = linear(k4, nn_size, 4)
    return dict(w1=w1, b1=b1, w2=w2, b2=b2, w3=w3, b3=b3, w4=w4, b4=b4)


def reference_forward(x, p):
    """Plain-JAX f32 reference matching torch's y = x @ W.T + b per layer."""
    lrelu = lambda v: jnp.where(v >= 0, v, NEG_SLOPE * v)
    h1 = lrelu(x @ p["w1"].T + p["b1"][:, 0])
    z = lrelu(h1 @ p["w2"].T + p["b2"][:, 0])
    h2 = lrelu(z @ p["w3"].T + p["b3"][:, 0])
    return h2 @ p["w4"].T + p["b4"][:, 0]


if __name__ == "__main__":
    key = jax.random.PRNGKey(0)
    kx, kp = jax.random.split(key)
    params = init_params(kp, NN_SIZE)

    # Smoke tests:
    #   (B=10,  default tile)  -> single (partial) grid step, lane-masked I/O
    #   (B=256, block_m=128)   -> multi-step "parallel" grid
    #   (B=300, block_m=128)   -> ragged last block (Pallas edge masking)
    cases = ((10, None), (256, 128), (300, 128))
    for case, (B, bmv) in enumerate(cases):
        x = jax.random.normal(jax.random.fold_in(kx, case), (B, 4),
                              dtype=jnp.float32)
        out = jax.block_until_ready(mlp_autoencoder(x, params, block_m=bmv))
        ref = reference_forward(x, params)
        assert out.shape == (B, 4)
        max_err = float(jnp.max(jnp.abs(out - ref)))
        assert jnp.allclose(out, ref, atol=1e-2, rtol=1e-2), \
            f"mismatch vs reference (B={B}, block_m={bmv}, max_err={max_err})"

    print("KERNEL_OK")
</pallas_src>

<mosaic_0001>
module attributes {stable_mosaic.version = 11 : i64} {
  func.func @mlp_autoencoder_kernel(%arg0: i32, %arg1: memref<4x128xf32, #tpu.memory_space<vmem>>, %arg2: memref<512x4xbf16, #tpu.memory_space<vmem>>, %arg3: memref<512x1xf32, #tpu.memory_space<vmem>>, %arg4: memref<8x512xbf16, #tpu.memory_space<vmem>>, %arg5: memref<8x1xf32, #tpu.memory_space<vmem>>, %arg6: memref<512x8xbf16, #tpu.memory_space<vmem>>, %arg7: memref<512x1xf32, #tpu.memory_space<vmem>>, %arg8: memref<8x512xbf16, #tpu.memory_space<vmem>>, %arg9: memref<8x1xf32, #tpu.memory_space<vmem>>, %arg10: memref<4x128xf32, #tpu.memory_space<vmem>>) attributes {dimension_semantics = [#tpu.dimension_semantics<parallel>], iteration_bounds = array<i64: 1>, scalar_prefetch = 0 : i64, scratch_operands = 0 : i64, tpu.core_type = #tpu.core_type<tc>, window_params = [{transform_indices = @transform_0, window_bounds = array<i64: 4, 128>}, {pipeline_mode = #tpu.pipeline_mode<synchronous>, transform_indices = @transform_1, window_bounds = array<i64: 512, 4>}, {pipeline_mode = #tpu.pipeline_mode<synchronous>, transform_indices = @transform_2, window_bounds = array<i64: 512, 1>}, {pipeline_mode = #tpu.pipeline_mode<synchronous>, transform_indices = @transform_3, window_bounds = array<i64: 8, 512>}, {pipeline_mode = #tpu.pipeline_mode<synchronous>, transform_indices = @transform_4, window_bounds = array<i64: 8, 1>}, {pipeline_mode = #tpu.pipeline_mode<synchronous>, transform_indices = @transform_5, window_bounds = array<i64: 512, 8>}, {pipeline_mode = #tpu.pipeline_mode<synchronous>, transform_indices = @transform_6, window_bounds = array<i64: 512, 1>}, {pipeline_mode = #tpu.pipeline_mode<synchronous>, transform_indices = @transform_7, window_bounds = array<i64: 8, 512>}, {pipeline_mode = #tpu.pipeline_mode<synchronous>, transform_indices = @transform_8, window_bounds = array<i64: 8, 1>}, {transform_indices = @transform_9, window_bounds = array<i64: 4, 128>}]} {
    %c0 = arith.constant 0 : index
    %c0_0 = arith.constant 0 : index
    %0 = vector.load %arg1[%c0, %c0_0] : memref<4x128xf32, #tpu.memory_space<vmem>>, vector<4x128xf32>
    %1 = arith.truncf %0 : vector<4x128xf32> to vector<4x128xbf16>
    %c0_1 = arith.constant 0 : index
    %c0_2 = arith.constant 0 : index
    %2 = vector.load %arg2[%c0_1, %c0_2] : memref<512x4xbf16, #tpu.memory_space<vmem>>, vector<512x4xbf16>
    %cst = arith.constant dense<0.000000e+00> : vector<512x128xf32>
    %3 = tpu.matmul %2, %1, %cst {dimension_numbers = #tpu.dot_dimension_numbers<[1], [0], [0], [1], [0, 0, 1, 1], [], []>} : vector<512x4xbf16>, vector<4x128xbf16>, vector<512x128xf32> -> vector<512x128xf32>
    %c0_3 = arith.constant 0 : index
    %c0_4 = arith.constant 0 : index
    %4 = vector.load %arg3[%c0_3, %c0_4] : memref<512x1xf32, #tpu.memory_space<vmem>>, vector<512x1xf32>
    %5 = vector.broadcast %4 : vector<512x1xf32> to vector<512x128xf32>
    %6 = arith.addf %3, %5 : vector<512x128xf32>
    %cst_5 = arith.constant 0.00999999977 : f32
    %7 = vector.broadcast %cst_5 : f32 to vector<512x128xf32>
    %8 = arith.mulf %7, %6 : vector<512x128xf32>
    %9 = arith.maximumf %6, %8 : vector<512x128xf32>
    %10 = arith.truncf %9 : vector<512x128xf32> to vector<512x128xbf16>
    %c0_6 = arith.constant 0 : index
    %c0_7 = arith.constant 0 : index
    %11 = vector.load %arg4[%c0_6, %c0_7] : memref<8x512xbf16, #tpu.memory_space<vmem>>, vector<8x512xbf16>
    %cst_8 = arith.constant dense<0.000000e+00> : vector<8x128xf32>
    %12 = tpu.matmul %11, %10, %cst_8 {dimension_numbers = #tpu.dot_dimension_numbers<[1], [0], [0], [1], [0, 0, 1, 1], [], []>} : vector<8x512xbf16>, vector<512x128xbf16>, vector<8x128xf32> -> vector<8x128xf32>
    %c0_9 = arith.constant 0 : index
    %c0_10 = arith.constant 0 : index
    %13 = vector.load %arg5[%c0_9, %c0_10] : memref<8x1xf32, #tpu.memory_space<vmem>>, vector<8x1xf32>
    %14 = vector.broadcast %13 : vector<8x1xf32> to vector<8x128xf32>
    %15 = arith.addf %12, %14 : vector<8x128xf32>
    %cst_11 = arith.constant 0.00999999977 : f32
    %16 = vector.broadcast %cst_11 : f32 to vector<8x128xf32>
    %17 = arith.mulf %16, %15 : vector<8x128xf32>
    %18 = arith.maximumf %15, %17 : vector<8x128xf32>
    %19 = arith.truncf %18 : vector<8x128xf32> to vector<8x128xbf16>
    %c0_12 = arith.constant 0 : index
    %c0_13 = arith.constant 0 : index
    %20 = vector.load %arg6[%c0_12, %c0_13] : memref<512x8xbf16, #tpu.memory_space<vmem>>, vector<512x8xbf16>
    %cst_14 = arith.constant dense<0.000000e+00> : vector<512x128xf32>
    %21 = tpu.matmul %20, %19, %cst_14 {dimension_numbers = #tpu.dot_dimension_numbers<[1], [0], [0], [1], [0, 0, 1, 1], [], []>} : vector<512x8xbf16>, vector<8x128xbf16>, vector<512x128xf32> -> vector<512x128xf32>
    %c0_15 = arith.constant 0 : index
    %c0_16 = arith.constant 0 : index
    %22 = vector.load %arg7[%c0_15, %c0_16] : memref<512x1xf32, #tpu.memory_space<vmem>>, vector<512x1xf32>
    %23 = vector.broadcast %22 : vector<512x1xf32> to vector<512x128xf32>
    %24 = arith.addf %21, %23 : vector<512x128xf32>
    %cst_17 = arith.constant 0.00999999977 : f32
    %25 = vector.broadcast %cst_17 : f32 to vector<512x128xf32>
    %26 = arith.mulf %25, %24 : vector<512x128xf32>
    %27 = arith.maximumf %24, %26 : vector<512x128xf32>
    %28 = arith.truncf %27 : vector<512x128xf32> to vector<512x128xbf16>
    %c0_18 = arith.constant 0 : index
    %c0_19 = arith.constant 0 : index
    %29 = vector.load %arg8[%c0_18, %c0_19] : memref<8x512xbf16, #tpu.memory_space<vmem>>, vector<8x512xbf16>
    %cst_20 = arith.constant dense<0.000000e+00> : vector<8x128xf32>
    %30 = tpu.matmul %29, %28, %cst_20 {dimension_numbers = #tpu.dot_dimension_numbers<[1], [0], [0], [1], [0, 0, 1, 1], [], []>} : vector<8x512xbf16>, vector<512x128xbf16>, vector<8x128xf32> -> vector<8x128xf32>
    %c0_21 = arith.constant 0 : index
    %c0_22 = arith.constant 0 : index
    %31 = vector.load %arg9[%c0_21, %c0_22] : memref<8x1xf32, #tpu.memory_space<vmem>>, vector<8x1xf32>
    %32 = vector.broadcast %31 : vector<8x1xf32> to vector<8x128xf32>
    %33 = arith.addf %30, %32 : vector<8x128xf32>
    %34 = vector.extract_strided_slice %33 {offsets = [0, 0], sizes = [4, 128], strides = [1, 1]} : vector<8x128xf32> to vector<4x128xf32>
    %c0_23 = arith.constant 0 : index
    %c0_24 = arith.constant 0 : index
    %35 = vector.load %arg10[%c0_23, %c0_24] : memref<4x128xf32, #tpu.memory_space<vmem>>, vector<4x128xf32>
    tpu.vector_store %arg10[%c0_23, %c0_24], %34 {strides = array<i32>} : memref<4x128xf32, #tpu.memory_space<vmem>>, vector<4x128xf32>,
    return
  }
  func.func @transform_0(%arg0: i32) -> (i32, i32) {
    %c0_i32 = arith.constant 0 : i32
    %c0_i32_0 = arith.constant 0 : i32
    return %c0_i32, %arg0 : i32, i32
  }
  func.func @transform_1(%arg0: i32) -> (i32, i32) {
    %c0_i32 = arith.constant 0 : i32
    %c0_i32_0 = arith.constant 0 : i32
    %c0_i32_1 = arith.constant 0 : i32
    return %c0_i32, %c0_i32_0 : i32, i32
  }
  func.func @transform_2(%arg0: i32) -> (i32, i32) {
    %c0_i32 = arith.constant 0 : i32
    %c0_i32_0 = arith.constant 0 : i32
    %c0_i32_1 = arith.constant 0 : i32
    return %c0_i32, %c0_i32_0 : i32, i32
  }
  func.func @transform_3(%arg0: i32) -> (i32, i32) {
    %c0_i32 = arith.constant 0 : i32
    %c0_i32_0 = arith.constant 0 : i32
    %c0_i32_1 = arith.constant 0 : i32
    return %c0_i32, %c0_i32_0 : i32, i32
  }
  func.func @transform_4(%arg0: i32) -> (i32, i32) {
    %c0_i32 = arith.constant 0 : i32
    %c0_i32_0 = arith.constant 0 : i32
    %c0_i32_1 = arith.constant 0 : i32
    return %c0_i32, %c0_i32_0 : i32, i32
  }
  func.func @transform_5(%arg0: i32) -> (i32, i32) {
    %c0_i32 = arith.constant 0 : i32
    %c0_i32_0 = arith.constant 0 : i32
    %c0_i32_1 = arith.constant 0 : i32
    return %c0_i32, %c0_i32_0 : i32, i32
  }
  func.func @transform_6(%arg0: i32) -> (i32, i32) {
    %c0_i32 = arith.constant 0 : i32
    %c0_i32_0 = arith.constant 0 : i32
    %c0_i32_1 = arith.constant 0 : i32
    return %c0_i32, %c0_i32_0 : i32, i32
  }
  func.func @transform_7(%arg0: i32) -> (i32, i32) {
    %c0_i32 = arith.constant 0 : i32
    %c0_i32_0 = arith.constant 0 : i32
    %c0_i32_1 = arith.constant 0 : i32
    return %c0_i32, %c0_i32_0 : i32, i32
  }
  func.func @transform_8(%arg0: i32) -> (i32, i32) {
    %c0_i32 = arith.constant 0 : i32
    %c0_i32_0 = arith.constant 0 : i32
    %c0_i32_1 = arith.constant 0 : i32
    return %c0_i32, %c0_i32_0 : i32, i32
  }
  func.func @transform_9(%arg0: i32) -> (i32, i32) {
    %c0_i32 = arith.constant 0 : i32
    %c0_i32_0 = arith.constant 0 : i32
    return %c0_i32, %arg0 : i32, i32
  }
}

</mosaic_0001>

<bundles_post_ra>
// kernel: _mlp_autoencoder_impl.1
= control target key start
LH: loop header
LB: loop body
LE: loop exit
PB: predicated region body
PF: predicated region fallthrough
CT: control target
= control target key end

     0   :  { %vm741_vm0 = vcmask 1041408   ;;  %v3096_v3 = vmov 0   ;;  %vm644_vm1 = vcmask 31744   ;;  %s4398_s0 = inlined_call_operand.vmem [shape: f32[4,10], index: 0, kind: input, shape index: {}]   ;;  %s4399_s1 = inlined_call_operand.vmem [shape: bf16[512,4], index: 1, kind: input, shape index: {}]   ;;  %s4400_s2 = inlined_call_operand.vmem [shape: f32[512,1], index: 2, kind: input, shape index: {}]   ;;  %s4401_s3 = inlined_call_operand.vmem [shape: bf16[8,512], index: 3, kind: input, shape index: {}]   ;;  %s4402_s4 = inlined_call_operand.vmem [shape: f32[8,1], index: 4, kind: input, shape index: {}]   ;;  %s4403_s5 = inlined_call_operand.vmem [shape: bf16[512,8], index: 5, kind: input, shape index: {}]   ;;  %s4404_s6 = inlined_call_operand.vmem [shape: f32[512,1], index: 6, kind: input, shape index: {}]   ;;  %s4405_s7 = inlined_call_operand.vmem [shape: bf16[8,512], index: 7, kind: input, shape index: {}]   ;;  %s4406_s8 = inlined_call_operand.vmem [shape: f32[8,1], index: 8, kind: input, shape index: {}]   ;;  %s4407_s9 = inlined_call_operand.hbm [shape: f32[4,10], index: 9, kind: output, shape index: {}]  }
   0x1   :  { %v130_v0 = vld [vmem:[%s4400_s2 + $0xf0] sm:$0xff]  ;;  %v34_v2 = vld [vmem:[%s4398_s0] sm:$0xf]  ;;  %3001 = vset.pattern.permute.xlu1 %v3096_v3  ;;  %3000 = vset.pattern.permute.xlu0 %v3096_v3  ;;  %v131_v5 = vld [vmem:[%s4400_s2 + $0xf8] sm:$0xff] }
   0x2   :  { %v114_v1 = vld [vmem:[%s4400_s2 + $0x70] sm:$0xff]  ;;  %v35_v4 = vpack.c.bf16 %v34_v2, %v34_v2  ;;  %316 = vperm.xlu0 %3000, %v130_v0   ;;  %v3002_v6 = vld [vmem:[%s4399_s1] sm:$0xff]   ;;  %v115_v8 = vld [vmem:[%s4400_s2 + $0x78] sm:$0xff] }
   0x3   :  { %236 = vperm.xlu1 %3001, %v114_v1   ;;  %v3003_v9 = vld [vmem:[%s4399_s1 + $0x8] sm:$0xff]   ;;  %2866 = vmatprep.mubr.msk.bf16.mxu0 %vm644_vm1, %v3002_v6  ;;  %v3004_v10 = vld [vmem:[%s4399_s1 + $0x10] sm:$0xff]   ;;  %v128_v11 = vld [vmem:[%s4400_s2 + $0xe0] sm:$0xff] }
   0x4   :  { %2996 = vmatprep.subr.msk.bf16.mxu0 %vm741_vm0, %v35_v4  ;;  %v743_v7 = vsel %vm741_vm0, %v35_v4, 0  ;;  %v129_v12 = vld [vmem:[%s4400_s2 + $0xe8] sm:$0xff]  ;;  %v112_v14 = vld [vmem:[%s4400_s2 + $0x60] sm:$0xff]  ;;  %v3005_v15 = vld [vmem:[%s4399_s1 + $0x18] sm:$0xff]  }
   0x5   :  { %2865 = vmatpush3.bf16.msra.mxu0 %v743_v7  ;;  %v113_v13 = vld [vmem:[%s4400_s2 + $0x68] sm:$0xff]  ;;  %v3006_v16 = vld [vmem:[%s4399_s1 + $0x20] sm:$0xff]   ;;  %v127_v17 = vld [vmem:[%s4400_s2 + $0xd8] sm:$0xff] }
   0x6   :  { %321 = vperm.xlu0 %3000, %v131_v5   ;;  %v126_v18 = vld [vmem:[%s4400_s2 + $0xd0] sm:$0xff]  ;;  %v111_v19 = vld [vmem:[%s4400_s2 + $0x58] sm:$0xff]  ;;  %v3007_v21 = vld [vmem:[%s4399_s1 + $0x28] sm:$0xff]  }
   0x7   :  { %241 = vperm.xlu1 %3001, %v115_v8   ;;  %v110_v20 = vld [vmem:[%s4400_s2 + $0x50] sm:$0xff]  ;;  %v125_v23 = vld [vmem:[%s4400_s2 + $0xc8] sm:$0xff]  ;;  %v124_v24 = vld [vmem:[%s4400_s2 + $0xc0] sm:$0xff] }
   0x8   :  { %2867 = vmatmul.mubr.msk.bf16.vlgmr.msra.gmra.mxu0 %vm644_vm1, %v3003_v9  ;;  %v3008_v22 = vld [vmem:[%s4399_s1 + $0x30] sm:$0xff]   ;;  %v109_v25 = vld [vmem:[%s4400_s2 + $0x48] sm:$0xff]  ;;  %v108_v26 = vld [vmem:[%s4400_s2 + $0x40] sm:$0xff] }
   0x9   :  { %2870 = vmatprep.mubr.msk.bf16.mxu0 %vm644_vm1, %v3004_v10  ;;  %v3009_v27 = vld [vmem:[%s4399_s1 + $0x38] sm:$0xff]   ;;  %v3010_v28 = vld [vmem:[%s4399_s1 + $0x40] sm:$0xff]   ;;  %v122_v30 = vld [vmem:[%s4400_s2 + $0xb0] sm:$0xff] }
   0xa   :  { %306 = vperm.xlu0 %3000, %v128_v11   ;;  %v123_v29 = vld [vmem:[%s4400_s2 + $0xb8] sm:$0xff]  ;;  %v106_v32 = vld [vmem:[%s4400_s2 + $0x30] sm:$0xff]  ;;  %v3011_v33 = vld [vmem:[%s4399_s1 + $0x48] sm:$0xff]  }
   0xb   :  { %311 = vperm.xlu1 %3001, %v129_v12   ;;  %v107_v31 = vld [vmem:[%s4400_s2 + $0x38] sm:$0xff]  ;;  %v3012_v34 = vld [vmem:[%s4399_s1 + $0x50] sm:$0xff]   ;;  %v121_v35 = vld [vmem:[%s4400_s2 + $0xa8] sm:$0xff] }
   0xc   :  { %v120_v36 = vld [vmem:[%s4400_s2 + $0xa0] sm:$0xff]  ;;  %v105_v37 = vld [vmem:[%s4400_s2 + $0x28] sm:$0xff]  ;;  %v3013_v39 = vld [vmem:[%s4399_s1 + $0x58] sm:$0xff]  }
   0xd   :  { %v104_v38 = vld [vmem:[%s4400_s2 + $0x20] sm:$0xff]  ;;  %v119_v41 = vld [vmem:[%s4400_s2 + $0x98] sm:$0xff]  ;;  %v118_v42 = vld [vmem:[%s4400_s2 + $0x90] sm:$0xff] }
   0xe   :  { %226 = vperm.xlu0 %3000, %v112_v14   ;;  %v3014_v40 = vld [vmem:[%s4399_s1 + $0x60] sm:$0xff]   ;;  %v103_v43 = vld [vmem:[%s4400_s2 + $0x18] sm:$0xff]  ;;  %v102_v44 = vld [vmem:[%s4400_s2 + $0x10] sm:$0xff] }
   0xf   :  { %231 = vperm.xlu1 %3001, %v113_v13   ;;  %v3015_v45 = vld [vmem:[%s4399_s1 + $0x68] sm:$0xff]   ;;  %v3016_v46 = vld [vmem:[%s4399_s1 + $0x70] sm:$0xff]   ;;  %v116_v48 = vld [vmem:[%s4400_s2 + $0x80] sm:$0xff] }
  0x10   :  { %2871 = vmatmul.mubr.msk.bf16.gmra.mxu0 %vm644_vm1, %v3005_v15  ;;  %v117_v47 = vld [vmem:[%s4400_s2 + $0x88] sm:$0xff]  ;;  %v100_v50 = vld [vmem:[%s4400_s2] sm:$0xff]  ;;  %v3017_v51 = vld [vmem:[%s4399_s1 + $0x78] sm:$0xff]  }
  0x11   :  { %2874 = vmatprep.mubr.msk.bf16.mxu0 %vm644_vm1, %v3006_v16  ;;  %v101_v49 = vld [vmem:[%s4400_s2 + $0x8] sm:$0xff]  ;;  %v3018_v52 = vld [vmem:[%s4399_s1 + $0x80] sm:$0xff]   ;;  %v163_v53 = vld [vmem:[%s4400_s2 + $0x1f8] sm:$0xff] }
  0x12   :  { %296 = vperm.xlu0 %3000, %v126_v18   ;;  %v162_v54 = vld [vmem:[%s4400_s2 + $0x1f0] sm:$0xff]  ;;  %v147_v55 = vld [vmem:[%s4400_s2 + $0x178] sm:$0xff]  ;;  %v3019_v57 = vld [vmem:[%s4399_s1 + $0x88] sm:$0xff]  }
  0x13   :  { %301 = vperm.xlu1 %3001, %v127_v17   ;;  %v146_v56 = vld [vmem:[%s4400_s2 + $0x170] sm:$0xff]  ;;  %v161_v59 = vld [vmem:[%s4400_s2 + $0x1e8] sm:$0xff]  ;;  %v160_v60 = vld [vmem:[%s4400_s2 + $0x1e0] sm:$0xff] }
  0x14   :  { %v3020_v58 = vld [vmem:[%s4399_s1 + $0x90] sm:$0xff]   ;;  %v145_v61 = vld [vmem:[%s4400_s2 + $0x168] sm:$0xff]  ;;  %v144_v62 = vld [vmem:[%s4400_s2 + $0x160] sm:$0xff] }
  0x15   :  { %v3021_v63 = vld [vmem:[%s4399_s1 + $0x98] sm:$0xff]   ;;  %v3022_v0 = vld [vmem:[%s4399_s1 + $0xa0] sm:$0xff]   ;;  %v158_v2 = vld [vmem:[%s4400_s2 + $0x1d0] sm:$0xff] }
  0x16   :  { %216 = vperm.xlu0 %3000, %v110_v20   ;;  %v159_v1 = vld [vmem:[%s4400_s2 + $0x1d8] sm:$0xff]  ;;  %v142_v4 = vld [vmem:[%s4400_s2 + $0x150] sm:$0xff]  ;;  %v3023_v5 = vld [vmem:[%s4399_s1 + $0xa8] sm:$0xff]  }
  0x17   :  { %221 = vperm.xlu1 %3001, %v111_v19   ;;  %v143_v3 = vld [vmem:[%s4400_s2 + $0x158] sm:$0xff]  ;;  %v3024_v6 = vld [vmem:[%s4399_s1 + $0xb0] sm:$0xff]   ;;  %v157_v7 = vld [vmem:[%s4400_s2 + $0x1c8] sm:$0xff] }
  0x18   :  { %2875 = vmatmul.mubr.msk.bf16.gmra.mxu0 %vm644_vm1, %v3007_v21  ;;  %v156_v8 = vld [vmem:[%s4400_s2 + $0x1c0] sm:$0xff] }
  0x19   :  { %2878 = vmatprep.mubr.msk.bf16.mxu0 %vm644_vm1, %v3008_v22 }
  0x1a   :  { %286 = vperm.xlu0 %3000, %v124_v24  }
  0x1b   :  { %291 = vperm.xlu1 %3001, %v125_v23  }
  0x1e   :  { %206 = vperm.xlu0 %3000, %v108_v26  }
  0x1f   :  { %211 = vperm.xlu1 %3001, %v109_v25  }
  0x20   :  { %2879 = vmatmul.mubr.msk.bf16.gmra.mxu0 %vm644_vm1, %v3009_v27 }
  0x21   :  { %2882 = vmatprep.mubr.msk.bf16.mxu0 %vm644_vm1, %v3010_v28 }
  0x22   :  { %276 = vperm.xlu0 %3000, %v122_v30  }
  0x23   :  { %281 = vperm.xlu1 %3001, %v123_v29  }
  0x26   :  { %196 = vperm.xlu0 %3000, %v106_v32  }
  0x27   :  { %201 = vperm.xlu1 %3001, %v107_v31  }
  0x28   :  { %2883 = vmatmul.mubr.msk.bf16.gmra.mxu0 %vm644_vm1, %v3011_v33 }
  0x29   :  { %2886 = vmatprep.mubr.msk.bf16.mxu0 %vm644_vm1, %v3012_v34 }
  0x2a   :  { %266 = vperm.xlu0 %3000, %v120_v36  }
  0x2b   :  { %271 = vperm.xlu1 %3001, %v121_v35  }
  0x2e   :  { %186 = vperm.xlu0 %3000, %v104_v38  }
  0x2f   :  { %191 = vperm.xlu1 %3001, %v105_v37  }
  0x30   :  { %2887 = vmatmul.mubr.msk.bf16.gmra.mxu0 %vm644_vm1, %v3013_v39 }
  0x31   :  { %2890 = vmatprep.mubr.msk.bf16.mxu0 %vm644_vm1, %v3014_v40 }
  0x32   :  { %256 = vperm.xlu0 %3000, %v118_v42  }
  0x33   :  { %261 = vperm.xlu1 %3001, %v119_v41  }
  0x36   :  { %176 = vperm.xlu0 %3000, %v102_v44  }
  0x37   :  { %181 = vperm.xlu1 %3001, %v103_v43  }
  0x38   :  { %2891 = vmatmul.mubr.msk.bf16.gmra.mxu0 %vm644_vm1, %v3015_v45 }
  0x39   :  { %2894 = vmatprep.mubr.msk.bf16.mxu0 %vm644_vm1, %v3016_v46 }
  0x3a   :  { %246 = vperm.xlu0 %3000, %v116_v48  }
  0x3b   :  { %251 = vperm.xlu1 %3001, %v117_v47  }
  0x3e   :  { %166 = vperm.xlu0 %3000, %v100_v50  }
  0x3f   :  { %171 = vperm.xlu1 %3001, %v101_v49  }
  0x40   :  { %2895 = vmatmul.mubr.msk.bf16.gmra.mxu0 %vm644_vm1, %v3017_v51 }
  0x41   :  { %2898 = vmatprep.mubr.msk.bf16.mxu0 %vm644_vm1, %v3018_v52 }
  0x42   :  { %476 = vperm.xlu0 %3000, %v162_v54  }
  0x43   :  { %481 = vperm.xlu1 %3001, %v163_v53  }
  0x46   :  { %396 = vperm.xlu0 %3000, %v146_v56  }
  0x47   :  { %401 = vperm.xlu1 %3001, %v147_v55  }
  0x48   :  { %2899 = vmatmul.mubr.msk.bf16.gmra.mxu0 %vm644_vm1, %v3019_v57 }
  0x49   :  { %2902 = vmatprep.mubr.msk.bf16.mxu0 %vm644_vm1, %v3020_v58 }
  0x4a   :  { %466 = vperm.xlu0 %3000, %v160_v60  }
  0x4b   :  { %471 = vperm.xlu1 %3001, %v161_v59  }
  0x4e   :  { %386 = vperm.xlu0 %3000, %v144_v62  }
  0x4f   :  { %391 = vperm.xlu1 %3001, %v145_v61  }
  0x50   :  { %2903 = vmatmul.mubr.msk.bf16.gmra.mxu0 %vm644_vm1, %v3021_v63 }
  0x51   :  { %2906 = vmatprep.mubr.msk.bf16.mxu0 %vm644_vm1, %v3022_v0 }
  0x52   :  { %456 = vperm.xlu0 %3000, %v158_v2  }
  0x53   :  { %461 = vperm.xlu1 %3001, %v159_v1  }
  0x56   :  { %376 = vperm.xlu0 %3000, %v142_v4  }
  0x57   :  { %381 = vperm.xlu1 %3001, %v143_v3  }
  0x58   :  { %2907 = vmatmul.mubr.msk.bf16.gmra.mxu0 %vm644_vm1, %v3023_v5 }
  0x59   :  { %2910 = vmatprep.mubr.msk.bf16.mxu0 %vm644_vm1, %v3024_v6 }
  0x5a   :  { %14 = vsyncpa [#allocation3], 0  ;;  %446 = vperm.xlu0 %3000, %v156_v8   ;;  %v141_v9 = vld [vmem:[%s4400_s2 + $0x148] sm:$0xff]  ;;  %v140_v10 = vld [vmem:[%s4400_s2 + $0x140] sm:$0xff]  ;;  %vm1907_vm2 = vcmask 64512   ;;  %vm2004_vm3 = vcmask 1043456  }
  0x5b   :  { %451 = vperm.xlu1 %3001, %v157_v7   ;;  %v3025_v11 = vld [vmem:[%s4399_s1 + $0xb8] sm:$0xff]   ;;  %v3026_v12 = vld [vmem:[%s4399_s1 + $0xc0] sm:$0xff]   ;;  %v154_v14 = vld [vmem:[%s4400_s2 + $0x1b0] sm:$0xff] }
  0x5c   :  { %v155_v13 = vld [vmem:[%s4400_s2 + $0x1b8] sm:$0xff]  ;;  %v138_v16 = vld [vmem:[%s4400_s2 + $0x130] sm:$0xff]  ;;  %v3027_v17 = vld [vmem:[%s4399_s1 + $0xc8] sm:$0xff]  }
  0x5d   :  { %v139_v15 = vld [vmem:[%s4400_s2 + $0x138] sm:$0xff]  ;;  %v3028_v18 = vld [vmem:[%s4399_s1 + $0xd0] sm:$0xff]   ;;  %v153_v19 = vld [vmem:[%s4400_s2 + $0x1a8] sm:$0xff] }
  0x5e   :  { %366 = vperm.xlu0 %3000, %v140_v10   ;;  %v152_v20 = vld [vmem:[%s4400_s2 + $0x1a0] sm:$0xff]  ;;  %v137_v21 = vld [vmem:[%s4400_s2 + $0x128] sm:$0xff]  ;;  %v3029_v23 = vld [vmem:[%s4399_s1 + $0xd8] sm:$0xff]  }
  0x5f   :  { %371 = vperm.xlu1 %3001, %v141_v9   ;;  %v136_v22 = vld [vmem:[%s4400_s2 + $0x120] sm:$0xff]  ;;  %v151_v25 = vld [vmem:[%s4400_s2 + $0x198] sm:$0xff]  ;;  %v150_v26 = vld [vmem:[%s4400_s2 + $0x190] sm:$0xff] }
  0x60   :  { %2911 = vmatmul.mubr.msk.bf16.gmra.mxu0 %vm644_vm1, %v3025_v11  ;;  %v3030_v24 = vld [vmem:[%s4399_s1 + $0xe0] sm:$0xff]   ;;  %v135_v27 = vld [vmem:[%s4400_s2 + $0x118] sm:$0xff]  ;;  %v134_v28 = vld [vmem:[%s4400_s2 + $0x110] sm:$0xff] }
  0x61   :  { %2914 = vmatprep.mubr.msk.bf16.mxu0 %vm644_vm1, %v3026_v12  ;;  %v3031_v29 = vld [vmem:[%s4399_s1 + $0xe8] sm:$0xff]   ;;  %v3032_v30 = vld [vmem:[%s4399_s1 + $0xf0] sm:$0xff]   ;;  %v148_v32 = vld [vmem:[%s4400_s2 + $0x180] sm:$0xff] }
  0x62   :  { %436 = vperm.xlu0 %3000, %v154_v14   ;;  %v149_v31 = vld [vmem:[%s4400_s2 + $0x188] sm:$0xff]  ;;  %v132_v34 = vld [vmem:[%s4400_s2 + $0x100] sm:$0xff]  ;;  %v3033_v35 = vld [vmem:[%s4399_s1 + $0xf8] sm:$0xff]  }
  0x63   :  { %441 = vperm.xlu1 %3001, %v155_v13   ;;  %v133_v33 = vld [vmem:[%s4400_s2 + $0x108] sm:$0xff]  ;;  %v1393_v38 = vld [vmem:[%s4404_s6 + $0xf0] sm:$0xff]  ;;  %v1196_v39 = vld [vmem:[%s4402_s4] sm:$0xff] }
  0x64   :  { %v1377_v42 = vld [vmem:[%s4404_s6 + $0x70] sm:$0xff]  ;;  %v1394_v43 = vld [vmem:[%s4404_s6 + $0xf8] sm:$0xff]  ;;  %v1391_v46 = vld [vmem:[%s4404_s6 + $0xe0] sm:$0xff] }
  0x65   :  { %v1378_v47 = vld [vmem:[%s4404_s6 + $0x78] sm:$0xff]  ;;  %v1375_v50 = vld [vmem:[%s4404_s6 + $0x60] sm:$0xff]  ;;  %v1392_v51 = vld [vmem:[%s4404_s6 + $0xe8] sm:$0xff] }
  0x66   :  { %356 = vperm.xlu0 %3000, %v138_v16   ;;  %v1389_v54 = vld [vmem:[%s4404_s6 + $0xd0] sm:$0xff]  ;;  %v1376_v55 = vld [vmem:[%s4404_s6 + $0x68] sm:$0xff]  ;;  %v1390_v59 = vld [vmem:[%s4404_s6 + $0xd8] sm:$0xff] }
  0x67   :  { %361 = vperm.xlu1 %3001, %v139_v15   ;;  %v1373_v58 = vld [vmem:[%s4404_s6 + $0x50] sm:$0xff]  ;;  %v1387_v62 = vld [vmem:[%s4404_s6 + $0xc0] sm:$0xff]  ;;  %v1374_v63 = vld [vmem:[%s4404_s6 + $0x58] sm:$0xff] }
  0x68   :  { %2915 = vmatmul.mubr.msk.bf16.gmra.mxu0 %vm644_vm1, %v3027_v17  ;;  %v1371_v2 = vld [vmem:[%s4404_s6 + $0x40] sm:$0xff]  ;;  %v1388_v3 = vld [vmem:[%s4404_s6 + $0xc8] sm:$0xff]  ;;  %v1385_v6 = vld [vmem:[%s4404_s6 + $0xb0] sm:$0xff] }
  0x69   :  { %2918 = vmatprep.mubr.msk.bf16.mxu0 %vm644_vm1, %v3028_v18  ;;  %v1372_v7 = vld [vmem:[%s4404_s6 + $0x48] sm:$0xff]  ;;  %v1369_v10 = vld [vmem:[%s4404_s6 + $0x30] sm:$0xff]  ;;  %v1386_v11 = vld [vmem:[%s4404_s6 + $0xb8] sm:$0xff] }
  0x6a   :  { %426 = vperm.xlu0 %3000, %v152_v20   ;;  %v1383_v14 = vld [vmem:[%s4404_s6 + $0xa0] sm:$0xff]  ;;  %v1370_v15 = vld [vmem:[%s4404_s6 + $0x38] sm:$0xff] }
  0x6b   :  { %431 = vperm.xlu1 %3001, %v153_v19   ;;  %v3588_v18 = vld [vmem:[%s4401_s3] sm:$0xff] }
  0x6c   :  { %4410 = vst [vmem:[#allocation5_spill] sm:$0xff] %v3588_v18  ;;  %v2639_v19 = vcombine.high %v3588_v18, %v3588_v18  ;;  %v1367_v20 = vld [vmem:[%s4404_s6 + $0x20] sm:$0xff] }
  0x6e   :  { %346 = vperm.xlu0 %3000, %v136_v22   ;;  %1248 = vmatprep.mubr.bf16.mxu1 %v2639_v19 }
  0x6f   :  { %351 = vperm.xlu1 %3001, %v137_v21   ;;  %v1384_v21 = vld [vmem:[%s4404_s6 + $0xa8] sm:$0xff] }
  0x70   :  { %2919 = vmatmul.mubr.msk.bf16.gmra.mxu0 %vm644_vm1, %v3029_v23 }
  0x71   :  { %2922 = vmatprep.mubr.msk.bf16.mxu0 %vm644_vm1, %v3030_v24  ;;  %v1381_v24 = vld [vmem:[%s4404_s6 + $0x90] sm:$0xff] }
  0x72   :  { %416 = vperm.xlu0 %3000, %v150_v26  }
  0x73   :  { %421 = vperm.xlu1 %3001, %v151_v25   ;;  %v1368_v25 = vld [vmem:[%s4404_s6 + $0x28] sm:$0xff] }
  0x76   :  { %336 = vperm.xlu0 %3000, %v134_v28   ;;  %v1365_v28 = vld [vmem:[%s4404_s6 + $0x10] sm:$0xff] }
  0x77   :  { %341 = vperm.xlu1 %3001, %v135_v27  }
  0x78   :  { %2923 = vmatmul.mubr.msk.bf16.gmra.mxu0 %vm644_vm1, %v3031_v29  ;;  %v1382_v29 = vld [vmem:[%s4404_s6 + $0x98] sm:$0xff] }
  0x79   :  { %2926 = vmatprep.mubr.msk.bf16.mxu0 %vm644_vm1, %v3032_v30 }
  0x7a   :  { %406 = vperm.xlu0 %3000, %v148_v32   ;;  %v1379_v32 = vld [vmem:[%s4404_s6 + $0x80] sm:$0xff] }
  0x7b   :  { %411 = vperm.xlu1 %3001, %v149_v31  }
  0x7d   :  { %v3470_v36 = vpop.permute.xlu0 %316 }
  0x7e   :  { %v3472_v37 = vpop.permute.xlu1 %236  ;;  %326 = vperm.xlu0 %3000, %v132_v34  }
  0x7f   :  { %331 = vperm.xlu1 %3001, %v133_v33   ;;  %v1366_v33 = vld [vmem:[%s4404_s6 + $0x18] sm:$0xff] }
  0x80   :  { %2927 = vmatmul.mubr.msk.bf16.gmra.mxu0 %vm644_vm1, %v3033_v35 }
  0x81   :  { %v3481_v40 = vpop.permute.xlu0 %321 }
  0x82   :  { %v3483_v41 = vpop.permute.xlu1 %241  ;;  %1199 = vperm.xlu0 %3000, %v1196_v39   ;;  %v1380_v39 = vld [vmem:[%s4404_s6 + $0x88] sm:$0xff] }
  0x83   :  { %1579 = vperm.xlu1 %3001, %v1393_v38   ;;  %v1363_v38 = vld [vmem:[%s4404_s6] sm:$0xff] }
  0x85   :  { %v3491_v44 = vpop.permute.xlu0 %306 }
  0x86   :  { %v3493_v45 = vpop.permute.xlu1 %311  ;;  %1584 = vperm.xlu0 %3000, %v1394_v43  }
  0x87   :  { %1499 = vperm.xlu1 %3001, %v1377_v42  }
  0x89   :  { %v3503_v49 = vpop.permute.xlu0 %226 }
  0x8a   :  { %v3501_v48 = vpop.permute.xlu1 %231  ;;  %1504 = vperm.xlu0 %3000, %v1378_v47   ;;  %v1364_v47 = vld [vmem:[%s4404_s6 + $0x8] sm:$0xff] }
  0x8b   :  { %1569 = vperm.xlu1 %3001, %v1391_v46   ;;  %v1425_v46 = vld [vmem:[%s4404_s6 + $0x1f0] sm:$0xff] }
  0x8d   :  { %v3513_v53 = vpop.permute.xlu0 %296 }
  0x8e   :  { %v3511_v52 = vpop.permute.xlu1 %301  ;;  %1574 = vperm.xlu0 %3000, %v1392_v51  }
  0x8f   :  { %1489 = vperm.xlu1 %3001, %v1375_v50  }
  0x91   :  { %v3523_v57 = vpop.permute.xlu0 %216 }
  0x92   :  { %v3521_v56 = vpop.permute.xlu1 %221  ;;  %1494 = vperm.xlu0 %3000, %v1376_v55   ;;  %v1426_v55 = vld [vmem:[%s4404_s6 + $0x1f8] sm:$0xff] }
  0x93   :  { %1559 = vperm.xlu1 %3001, %v1389_v54   ;;  %v1409_v54 = vld [vmem:[%s4404_s6 + $0x170] sm:$0xff] }
  0x95   :  { %v3533_v61 = vpop.permute.xlu0 %286 }
  0x96   :  { %v3531_v60 = vpop.permute.xlu1 %291  ;;  %1564 = vperm.xlu0 %3000, %v1390_v59  }
  0x97   :  { %1479 = vperm.xlu1 %3001, %v1373_v58  }
  0x99   :  { %v3543_v1 = vpop.permute.xlu0 %206 }
  0x9a   :  { %v3541_v0 = vpop.permute.xlu1 %211  ;;  %1484 = vperm.xlu0 %3000, %v1374_v63   ;;  %v1423_v63 = vld [vmem:[%s4404_s6 + $0x1e0] sm:$0xff] }
  0x9b   :  { %1549 = vperm.xlu1 %3001, %v1387_v62  }
  0x9d   :  { %v3553_v5 = vpop.permute.xlu0 %276 }
  0x9e   :  { %v3551_v4 = vpop.permute.xlu1 %281  ;;  %1554 = vperm.xlu0 %3000, %v1388_v3  }
  0x9f   :  { %1469 = vperm.xlu1 %3001, %v1371_v2   ;;  %v1410_v2 = vld [vmem:[%s4404_s6 + $0x178] sm:$0xff] }
  0xa1   :  { %v3563_v9 = vpop.permute.xlu0 %196 }
  0xa2   :  { %v3561_v8 = vpop.permute.xlu1 %201  ;;  %1474 = vperm.xlu0 %3000, %v1372_v7  }
  0xa3   :  { %1539 = vperm.xlu1 %3001, %v1385_v6  }
  0xa5   :  { %v3573_v13 = vpop.permute.xlu0 %266 }
  0xa6   :  { %v3571_v12 = vpop.permute.xlu1 %271  ;;  %1544 = vperm.xlu0 %3000, %v1386_v11  }
  0xa7   :  { %1459 = vperm.xlu1 %3001, %v1369_v10  }
  0xa9   :  { %v3583_v17 = vpop.permute.xlu0 %186 }
  0xaa   :  { %v3581_v16 = vpop.permute.xlu1 %191  ;;  %1464 = vperm.xlu0 %3000, %v1370_v15   ;;  %v1424_v15 = vld [vmem:[%s4404_s6 + $0x1e8] sm:$0xff] }
  0xab   :  { %1529 = vperm.xlu1 %3001, %v1383_v14   ;;  %v1407_v14 = vld [vmem:[%s4404_s6 + $0x160] sm:$0xff] }
  0xad   :  { %v3600_v23 = vpop.permute.xlu0 %256 }
  0xae   :  { %v3598_v22 = vpop.permute.xlu1 %261  ;;  %1534 = vperm.xlu0 %3000, %v1384_v21  }
  0xaf   :  { %1449 = vperm.xlu1 %3001, %v1367_v20  }
  0xb1   :  { %v177_v27 = vpop.permute.xlu0 %176 }
  0xb2   :  { %v182_v26 = vpop.permute.xlu1 %181  ;;  %1454 = vperm.xlu0 %3000, %v1368_v25  }
  0xb3   :  { %1519 = vperm.xlu1 %3001, %v1381_v24  }
  0xb5   :  { %v3616_v31 = vpop.permute.xlu0 %246 }
  0xb6   :  { %v3614_v30 = vpop.permute.xlu1 %251  ;;  %4411 = vst [vmem:[#allocation6_spill] sm:$0xff] %v3616_v31  ;;  %1524 = vperm.xlu0 %3000, %v1382_v29  }
  0xb7   :  { %1439 = vperm.xlu1 %3001, %v1365_v28  }
  0xb9   :  { %v167_v35 = vpop.permute.xlu0 %166 }
  0xba   :  { %v172_v34 = vpop.permute.xlu1 %171  ;;  %1444 = vperm.xlu0 %3000, %v1366_v33   ;;  %v1421_v33 = vld [vmem:[%s4404_s6 + $0x1d0] sm:$0xff] }
  0xbb   :  { %1509 = vperm.xlu1 %3001, %v1379_v32  }
  0xbd   :  { %v3632_v43 = vpop.permute.xlu0 %476 }
  0xbe   :  { %v3630_v42 = vpop.permute.xlu1 %481  ;;  %4413 = vst [vmem:[#allocation8_spill] sm:$0xff] %v3632_v43  ;;  %1514 = vperm.xlu0 %3000, %v1380_v39  }
  0xbf   :  { %4412 = vst [vmem:[#allocation7_spill] sm:$0xff] %v3630_v42  ;;  %1429 = vperm.xlu1 %3001, %v1363_v38  }
  0xc1   :  { %v3642_v51 = vpop.permute.xlu0 %396 }
  0xc2   :  { %v3640_v50 = vpop.permute.xlu1 %401  ;;  %4415 = vst [vmem:[#allocation10_spill] sm:$0xff] %v3642_v51  ;;  %1434 = vperm.xlu0 %3000, %v1364_v47  }
  0xc3   :  { %4414 = vst [vmem:[#allocation9_spill] sm:$0xff] %v3640_v50  ;;  %1739 = vperm.xlu1 %3001, %v1425_v46  }
  0xc5   :  { %v3652_v59 = vpop.permute.xlu0 %466 }
  0xc6   :  { %v3650_v58 = vpop.permute.xlu1 %471  ;;  %4417 = vst [vmem:[#allocation12_spill] sm:$0xff] %v3652_v59  ;;  %1744 = vperm.xlu0 %3000, %v1426_v55  }
  0xc7   :  { %4416 = vst [vmem:[#allocation11_spill] sm:$0xff] %v3650_v58  ;;  %1659 = vperm.xlu1 %3001, %v1409_v54  }
  0xc8   :  { %v2868_v62 = vpop.f32.mrf.mxu0 }
  0xc9   :  { %v788_v3 = vadd.f32 %v2868_v62, %v177_v27  ;;  %v3662_v7 = vpop.permute.xlu0 %386 }
  0xca   :  { %v3660_v6 = vpop.permute.xlu1 %391  ;;  %4419 = vst [vmem:[#allocation14_spill] sm:$0xff] %v3662_v7  ;;  %v779_v10 = vpop.f32.mrf.mxu0  ;;  %1664 = vperm.xlu0 %3000, %v1410_v2   ;;  %v1395_v7 = vld [vmem:[%s4404_s6 + $0x100] sm:$0xff] }
  0xcb   :  { %4418 = vst [vmem:[#allocation13_spill] sm:$0xff] %v3660_v6  ;;  %1729 = vperm.xlu1 %3001, %v1423_v63   ;;  %v780_v11 = vadd.f32 %v779_v10, %v167_v35  ;;  %v1036_v20 = vmul.f32 0.01, %v788_v3  ;;  %v1408_v35 = vld [vmem:[%s4404_s6 + $0x168] sm:$0xff]  ;;  %v1405_v10 = vld [vmem:[%s4404_s6 + $0x150] sm:$0xff] }
  0xcc   :  { %v2869_v19 = vpop.f32.mrf.mxu0 }
  0xcd   :  { %v791_v21 = vadd.f32 %v2869_v19, %v182_v26  ;;  %v3672_v25 = vpop.permute.xlu0 %456  ;;  %v1034_v28 = vmul.f32 0.01, %v780_v11  ;;  %v1100_v26 = vmax.f32 %v788_v3, %v1036_v20  ;;  %v1422_v3 = vld [vmem:[%s4404_s6 + $0x1d8] sm:$0xff] }
  0xce   :  { %v3670_v24 = vpop.permute.xlu1 %461  ;;  %4421 = vst [vmem:[#allocation16_spill] sm:$0xff] %v3672_v25  ;;  %v782_v27 = vpop.f32.mrf.mxu0  ;;  %1734 = vperm.xlu0 %3000, %v1424_v15  }
  0xcf   :  { %4420 = vst [vmem:[#allocation15_spill] sm:$0xff] %v3670_v24  ;;  %1649 = vperm.xlu1 %3001, %v1407_v14   ;;  %v1037_v29 = vmul.f32 0.01, %v791_v21  ;;  %v783_v32 = vadd.f32 %v782_v27, %v172_v34  ;;  %v1098_v34 = vmax.f32 %v780_v11, %v1034_v28 }
  0xd0   :  { %v2872_v38 = vpop.f32.mrf.mxu0 }
  0xd1   :  { %v1101_v39 = vmax.f32 %v791_v21, %v1037_v29  ;;  %v1035_v46 = vmul.f32 0.01, %v783_v32  ;;  %v804_v47 = vadd.f32 %v2872_v38, %v3563_v9  ;;  %v3681_v54 = vpop.permute.xlu0 %376  ;;  %v1419_v29 = vld [vmem:[%s4404_s6 + $0x1c0] sm:$0xff] }
  0xd2   :  { %4422 = vst [vmem:[#allocation17_spill] sm:$0xff] %v3681_v54  ;;  %v3683_v55 = vpop.permute.xlu1 %381  ;;  %v795_v62 = vpop.f32.mrf.mxu0  ;;  %1654 = vperm.xlu0 %3000, %v1408_v35  }
  0xd3   :  { %4423 = vst [vmem:[#allocation18_spill] sm:$0xff] %v3683_v55  ;;  %1719 = vperm.xlu1 %3001, %v1421_v33   ;;  %v1099_v63 = vmax.f32 %v783_v32, %v1035_v46  ;;  %v796_v2 = vadd.f32 %v795_v62, %v3583_v17  ;;  %v3692_v9 = vpack.c.bf16 %v1101_v39, %v1100_v26  ;;  %v1040_v15 = vmul.f32 0.01, %v804_v47  ;;  %v1406_v32 = vld [vmem:[%s4404_s6 + $0x158] sm:$0xff] }
  0xd4   :  { %v2873_v14 = vpop.f32.mrf.mxu0 }
  0xd5   :  { %4424 = vst [vmem:[#allocation19_spill] sm:$0xff] %v3692_v9  ;;  %v807_v19 = vadd.f32 %v2873_v14, %v3561_v8  ;;  %v3695_v20 = vpop.permute.xlu0 %446  ;;  %v3697_v11 = vpack.c.bf16 %v1099_v63, %v1098_v34  ;;  %v1038_v17 = vmul.f32 0.01, %v796_v2  ;;  %v1104_v35 = vmax.f32 %v804_v47, %v1040_v15  ;;  %v1403_v34 = vld [vmem:[%s4404_s6 + $0x140] sm:$0xff]  ;;  %v1420_v63 = vld [vmem:[%s4404_s6 + $0x1c8] sm:$0xff] }
  0xd6   :  { %4425 = vst [vmem:[#allocation20_spill] sm:$0xff] %v3695_v20  ;;  %v798_v21 = vpop.f32.mrf.mxu0  ;;  %1724 = vperm.xlu0 %3000, %v1422_v3   ;;  %v3706_v8 = vpop.permute.xlu1 %451 }
  0xd7   :  { %4426 = vst [vmem:[#allocation21_spill] sm:$0xff] %v3697_v11  ;;  %1639 = vperm.xlu1 %3001, %v1405_v10   ;;  %v1041_v27 = vmul.f32 0.01, %v807_v19  ;;  %v799_v28 = vadd.f32 %v798_v21, %v3581_v16  ;;  %4427 = vst [vmem:[#allocation22_spill] sm:$0xff] %v3706_v8  ;;  %v1102_v16 = vmax.f32 %v796_v2, %v1038_v17  ;;  %v1417_v2 = vld [vmem:[%s4404_s6 + $0x1b0] sm:$0xff] }
  0xd8   :  { %v3708_v33 = vpop.f32.mrf.mxu0 }
  0xd9   :  { %v1105_v38 = vmax.f32 %v807_v19, %v1041_v27  ;;  %v1039_v26 = vmul.f32 0.01, %v799_v28  ;;  %v3710_v39 = vpop.permute.xlu0 %366  ;;  %v1404_v19 = vld [vmem:[%s4404_s6 + $0x148] sm:$0xff]  ;;  %v3820_v24 = vadd.f32 %v3708_v33, %v3523_v57 }
  0xda   :  { %4428 = vst [vmem:[#allocation23_spill] sm:$0xff] %v3710_v39  ;;  %v3712_v46 = vpop.f32.mrf.mxu0  ;;  %1644 = vperm.xlu0 %3000, %v1406_v32   ;;  %v3726_v14 = vpop.permute.xlu1 %371 }
  0xdb   :  { %1709 = vperm.xlu1 %3001, %v1419_v29   ;;  %v1103_v62 = vmax.f32 %v799_v28, %v1039_v26  ;;  %v3720_v10 = vpack.c.bf16 %v1105_v38, %v1104_v35  ;;  %4431 = vst [vmem:[#allocation26_spill] sm:$0xff] %v3726_v14  ;;  %v1401_v28 = vld [vmem:[%s4404_s6 + $0x130] sm:$0xff]  ;;  %v1418_v29 = vld [vmem:[%s4404_s6 + $0x1b8] sm:$0xff]  ;;  %v3834_v33 = vmul.f32 0.01, %v3820_v24 }
  0xdc   :  { %v3722_v47 = vpop.f32.mrf.mxu0 }
  0xdd   :  { %4429 = vst [vmem:[#allocation24_spill] sm:$0xff] %v3720_v10  ;;  %v3724_v3 = vpack.c.bf16 %v1103_v62, %v1102_v16  ;;  %v3736_v21 = vpop.permute.xlu0 %436  ;;  %v1415_v16 = vld [vmem:[%s4404_s6 + $0x1a0] sm:$0xff]  ;;  %v1402_v62 = vld [vmem:[%s4404_s6 + $0x138] sm:$0xff] }
  0xde   :  { %v3728_v15 = vpop.f32.mrf.mxu0  ;;  %1714 = vperm.xlu0 %3000, %v1420_v63   ;;  %4432 = vst [vmem:[#allocation27_spill] sm:$0xff] %v3736_v21  ;;  %v3748_v32 = vpop.permute.xlu1 %441 }
  0xdf   :  { %4430 = vst [vmem:[#allocation25_spill] sm:$0xff] %v3724_v3  ;;  %1629 = vperm.xlu1 %3001, %v1403_v34   ;;  %4433 = vst [vmem:[#allocation28_spill] sm:$0xff] %v3748_v32 }
  0xe0   :  { %v3738_v17 = vpop.f32.mrf.mxu0 }
  0xe1   :  { %v3750_v38 = vpop.permute.xlu0 %356 }
  0xe2   :  { %v3740_v27 = vpop.f32.mrf.mxu0  ;;  %1634 = vperm.xlu0 %3000, %v1404_v19   ;;  %v3760_v63 = vpop.permute.xlu1 %361  ;;  %v1399_v19 = vld [vmem:[%s4404_s6 + $0x120] sm:$0xff] }
  0xe3   :  { %1699 = vperm.xlu1 %3001, %v1417_v2  }
  0xe4   :  { %v2881_v35 = vpop.f32.mrf.mxu0 }
  0xe5   :  { %v839_v59 = vadd.f32 %v2881_v35, %v3483_v41 }
  0xe6   :  { %v830_v26 = vpop.f32.mrf.mxu0  ;;  %1704 = vperm.xlu0 %3000, %v1418_v29   ;;  %v3770_v29 = vpop.permute.xlu0 %426 }
  0xe7   :  { %1619 = vperm.xlu1 %3001, %v1401_v28   ;;  %v1416_v28 = vld [vmem:[%s4404_s6 + $0x1a8] sm:$0xff]  ;;  %4435 = vst [vmem:[#allocation30_spill] sm:$0xff] %v3770_v29  ;;  %v3782_v32 = vpop.permute.xlu1 %431 }
  0xe8   :  { %v3758_v34 = vpop.f32.mrf.mxu0  ;;  %4436 = vst [vmem:[#allocation31_spill] sm:$0xff] %v3782_v32 }
  0xea   :  { %v3762_v2 = vpop.f32.mrf.mxu0  ;;  %1624 = vperm.xlu0 %3000, %v1402_v62   ;;  %v1400_v62 = vld [vmem:[%s4404_s6 + $0x128] sm:$0xff]  ;;  %v3786_v20 = vpop.permute.xlu0 %346 }
  0xeb   :  { %4434 = vst [vmem:[#allocation29_spill] sm:$0xff] %v3762_v2  ;;  %1689 = vperm.xlu1 %3001, %v1415_v16   ;;  %v1413_v16 = vld [vmem:[%s4404_s6 + $0x190] sm:$0xff]  ;;  %v3798_v8 = vpop.permute.xlu1 %351 }
  0xec   :  { %v3772_v21 = vpop.f32.mrf.mxu0 }
  0xee   :  { %v3774_v39 = vpop.f32.mrf.mxu0  ;;  %1694 = vperm.xlu0 %3000, %v1416_v28   ;;  %v1414_v28 = vld [vmem:[%s4404_s6 + $0x198] sm:$0xff]  ;;  %v3808_v55 = vpop.permute.xlu0 %416 }
  0xef   :  { %1609 = vperm.xlu1 %3001, %v1399_v19   ;;  %v1397_v19 = vld [vmem:[%s4404_s6 + $0x110] sm:$0xff]  ;;  %4437 = vst [vmem:[#allocation32_spill] sm:$0xff] %v3808_v55 }
  0xf0   :  { %v3784_v14 = vpop.f32.mrf.mxu0 }
  0xf2   :  { %v3788_v29 = vpop.f32.mrf.mxu0  ;;  %1614 = vperm.xlu0 %3000, %v1400_v62   ;;  %v1398_v62 = vld [vmem:[%s4404_s6 + $0x118] sm:$0xff]  ;;  %v337_v55 = vpop.permute.xlu0 %336 }
  0xf3   :  { %1679 = vperm.xlu1 %3001, %v1413_v16   ;;  %v1411_v16 = vld [vmem:[%s4404_s6 + $0x180] sm:$0xff] }
  0xf4   :  { %v3796_v54 = vpop.f32.mrf.mxu0 }
  0xf6   :  { %v3800_v32 = vpop.f32.mrf.mxu0  ;;  %1684 = vperm.xlu0 %3000, %v1414_v28   ;;  %v3816_v28 = vpop.permute.xlu1 %421 }
  0xf7   :  { %1599 = vperm.xlu1 %3001, %v1397_v19   ;;  %v1412_v19 = vld [vmem:[%s4404_s6 + $0x188] sm:$0xff]  ;;  %4438 = vst [vmem:[#allocation33_spill] sm:$0xff] %v3816_v28 }
  0xf8   :  { %v2892_v58 = vpop.f32.mrf.mxu0  ;;  %v1396_v28 = vld [vmem:[%s4404_s6 + $0x108] sm:$0xff] }
  0xfa   :  { %v875_v25 = vpop.f32.mrf.mxu0  ;;  %1604 = vperm.xlu0 %3000, %v1398_v62   ;;  %v2459_v62 = vld [vmem:[%s4406_s8] sm:$0xff]  ;;  %v342_v51 = vpop.permute.xlu1 %341 }
  0xfb   :  { %1669 = vperm.xlu1 %3001, %v1411_v16   ;;  %v3824_v16 = vadd.f32 %v3722_v47, %v3521_v56  ;;  %v836_v47 = vadd.f32 %v3738_v17, %v3472_v37 }
  0xfc   :  { %v2893_v42 = vpop.f32.mrf.mxu0 }
  0xfd   :  { %v3847_v41 = vmul.f32 0.01, %v3824_v16  ;;  %v887_v37 = vadd.f32 %v2893_v42, %v3511_v52 }
  0xfe   :  { %v878_v6 = vpop.f32.mrf.mxu0  ;;  %1674 = vperm.xlu0 %3000, %v1412_v19   ;;  %v3844_v19 = vadd.f32 %v830_v26, %v3501_v48 }
  0xff   :  { %1589 = vperm.xlu1 %3001, %v1395_v7   ;;  %v3838_v7 = vadd.f32 %v3712_v46, %v3543_v1  ;;  %v828_v1 = vadd.f32 %v3740_v27, %v3503_v49  ;;  %v1049_v46 = vmul.f32 0.01, %v839_v59  ;;  %v1048_v49 = vmul.f32 0.01, %v836_v47 }
 0x100   :  { %v2896_v57 = vpop.f32.mrf.mxu0  ;;  %v884_v27 = vadd.f32 %v2892_v58, %v3513_v53 }
 0x101   :  { %v900_v56 = vadd.f32 %v2896_v57, %v3470_v36  ;;  %v3852_v36 = vpop.permute.xlu0 %406  ;;  %v3858_v26 = vmul.f32 0.01, %v3838_v7  ;;  %v1046_v50 = vmul.f32 0.01, %v828_v1  ;;  %v1113_v11 = vmax.f32 %v839_v59, %v1049_v46 }
 0x102   :  { %v891_v43 = vpop.f32.mrf.mxu0  ;;  %1594 = vperm.xlu0 %3000, %v1396_v28   ;;  %4439 = vst [vmem:[#allocation34_spill] sm:$0xff] %v3852_v36  ;;  %v1112_v3 = vmax.f32 %v836_v47, %v1048_v49  ;;  %v1060_v10 = vmul.f32 0.01, %v884_v27 }
 0x103   :  { %2462 = vperm.xlu1 %3001, %v2459_v62   ;;  %v892_v35 = vadd.f32 %v891_v43, %v3491_v44  ;;  %v1064_v28 = vmul.f32 0.01, %v900_v56  ;;  %v3863_v44 = vadd.f32 %v3728_v15, %v3541_v0  ;;  %v1047_v43 = vmul.f32 0.01, %v3844_v19 }
 0x104   :  { %v2897_v17 = vpop.f32.mrf.mxu0  ;;  %v3873_v0 = vadd.f32 %v878_v6, %v3531_v60  ;;  %v3879_v60 = vadd.f32 %v3796_v54, %v3551_v4  ;;  %v1169_v47 = vpack.c.bf16 %v1113_v11, %v1112_v3 }
 0x105   :  { %v903_v62 = vadd.f32 %v2897_v17, %v3481_v40  ;;  %v1062_v57 = vmul.f32 0.01, %v892_v35  ;;  %v3870_v40 = vpop.permute.xlu1 %411  ;;  %v1061_v17 = vmul.f32 0.01, %v887_v37  ;;  %v1128_v53 = vmax.f32 %v900_v56, %v1064_v28  ;;  %v327_v2 = vpop.permute.xlu0 %326 }
 0x106   :  { %v894_v52 = vpop.f32.mrf.mxu0  ;;  %4440 = vst [vmem:[#allocation35_spill] sm:$0xff] %v3870_v40  ;;  %v1111_v42 = vmax.f32 %v3844_v19, %v1047_v43 }
 0x107   :  { %v1065_v48 = vmul.f32 0.01, %v903_v62  ;;  %v895_v36 = vadd.f32 %v894_v52, %v3493_v45  ;;  %v876_v45 = vadd.f32 %v875_v25, %v3533_v61  ;;  %v1126_v59 = vmax.f32 %v892_v35, %v1062_v57 }
 0x108   :  { %v2900_v15 = vpop.f32.mrf.mxu0  ;;  %v1125_v6 = vmax.f32 %v887_v37, %v1061_v17  ;;  %v1043_v61 = vmul.f32 0.01, %v3863_v44  ;;  %v1124_v25 = vmax.f32 %v884_v27, %v1060_v10 }
 0x109   :  { %v1063_v18 = vmul.f32 0.01, %v895_v36  ;;  %v916_v9 = vadd.f32 %v2900_v15, %v337_v55  ;;  %v1129_v58 = vmax.f32 %v903_v62, %v1065_v48  ;;  %v1059_v55 = vmul.f32 0.01, %v3873_v0 }
 0x10a   :  { %v907_v52 = vpop.f32.mrf.mxu0  ;;  %v1110_v48 = vmax.f32 %v828_v1, %v1046_v50  ;;  %v1058_v35 = vmul.f32 0.01, %v876_v45  ;;  %v1057_v50 = vmul.f32 0.01, %v3879_v60  ;;  %v1175_v1 = vpack.c.bf16 %v1125_v6, %v1124_v25 }
 0x10b   :  { %v1127_v46 = vmax.f32 %v895_v36, %v1063_v18  ;;  %v908_v40 = vadd.f32 %v907_v52, %v327_v2  ;;  %v1177_v31 = vpack.c.bf16 %v1129_v58, %v1128_v53  ;;  %v1068_v19 = vmul.f32 0.01, %v916_v9  ;;  %v332_v2 = vpop.permute.xlu1 %331 }
 0x10c   :  { %v2901_v56 = vpop.f32.mrf.mxu0  ;;  %v868_v18 = vadd.f32 %v3784_v14, %v3553_v5  ;;  %v1168_v11 = vpack.c.bf16 %v1111_v42, %v1110_v48  ;;  %v1107_v43 = vmax.f32 %v3863_v44, %v1043_v61  ;;  %v860_v42 = vadd.f32 %v3788_v29, %v3573_v13  ;;  %v4443_v48 = vld [vmem:[#allocation6_spill] sm:$0xff] }
 0x10d   :  { %v919_v28 = vadd.f32 %v2901_v56, %v342_v51  ;;  %2743 = vmatprep.subr.bf16.mxu1 %v1177_v31  ;;  %v1176_v62 = vpack.c.bf16 %v1127_v46, %v1126_v59  ;;  %v1066_v54 = vmul.f32 0.01, %v908_v40  ;;  %v863_v31 = vadd.f32 %v3800_v32, %v3571_v12 }
 0x10e   :  { %v910_v4 = vpop.f32.mrf.mxu0  ;;  %2744 = vmatpush3.bf16.msra.mxu1 %v1169_v47  ;;  %v1123_v51 = vmax.f32 %v3873_v0, %v1059_v55  ;;  %v1132_v5 = vmax.f32 %v916_v9, %v1068_v19  ;;  %v1056_v27 = vmul.f32 0.01, %v868_v18  ;;  %v1122_v57 = vmax.f32 %v876_v45, %v1058_v35  ;;  %v4444_v19 = vld [vmem:[#allocation29_spill] sm:$0xff] }
 0x10f   :  { %v1069_v36 = vmul.f32 0.01, %v919_v28  ;;  %v911_v37 = vadd.f32 %v910_v4, %v332_v2  ;;  %2745 = vmatprep.subr.bf16.mxu1 %v1176_v62  ;;  %v1130_v15 = vmax.f32 %v908_v40, %v1066_v54  ;;  %v855_v9 = vadd.f32 %v3772_v21, %v3598_v22 }
 0x110   :  { %v2904_v3 = vpop.f32.mrf.mxu0  ;;  %v1055_v44 = vmul.f32 0.01, %v863_v31  ;;  %v4441_v13 = vmax.f32 %v3820_v24, %v3834_v33  ;;  %v4442_v29 = vmax.f32 %v3824_v16, %v3847_v41  ;;  %v1174_v52 = vpack.c.bf16 %v1123_v51, %v1122_v57  ;;  %v4448_v57 = vld [vmem:[#allocation5_spill] sm:$0xff] }
 0x111   :  { %v1133_v10 = vmax.f32 %v919_v28, %v1069_v36  ;;  %v1067_v14 = vmul.f32 0.01, %v911_v37  ;;  %v932_v49 = vadd.f32 %v2904_v3, %v3750_v38  ;;  %v1121_v38 = vmax.f32 %v3879_v60, %v1057_v50  ;;  %v4445_v36 = vld [vmem:[#allocation24_spill] sm:$0xff] }
 0x112   :  { %v923_v17 = vpop.f32.mrf.mxu0  ;;  %2746 = vmatpush3.bf16.msra.mxu1 %v1168_v11  ;;  %v1167_v40 = vpack.c.bf16 %v4442_v29, %v4441_v13  ;;  %v1106_v22 = vmax.f32 %v3838_v7, %v3858_v26  ;;  %v852_v21 = vadd.f32 %v3758_v34, %v3600_v23  ;;  %v1120_v59 = vmax.f32 %v868_v18, %v1056_v27  ;;  %v3933_v27 = vld [vmem:[%s4401_s3 + $0x8] sm:$0xff] }
 0x113   :  { %v3893_v12 = vpack.c.bf16 %v1133_v10, %v1132_v5  ;;  %v1131_v32 = vmax.f32 %v911_v37, %v1067_v14  ;;  %v924_v0 = vadd.f32 %v923_v17, %v3786_v20  ;;  %2747 = vmatprep.subr.bf16.mxu1 %v1175_v1  ;;  %v1072_v45 = vmul.f32 0.01, %v932_v49  ;;  %v4446_v1 = vld [vmem:[#allocation25_spill] sm:$0xff] }
 0x114   :  { %v2905_v53 = vpop.f32.mrf.mxu0  ;;  %v1054_v24 = vmul.f32 0.01, %v860_v42  ;;  %v1053_v41 = vmul.f32 0.01, %v855_v9  ;;  %v1119_v6 = vmax.f32 %v863_v31, %v1055_v44  ;;  %v1166_v7 = vpack.c.bf16 %v1107_v43, %v1106_v22  ;;  %v4447_v43 = vld [vmem:[#allocation19_spill] sm:$0xff]  ;;  %v4450_v22 = vld [vmem:[#allocation9_spill] sm:$0xff] }
 0x115   :  { %v3905_v58 = vpack.c.bf16 %v1131_v32, %v1130_v15  ;;  %v935_v20 = vadd.f32 %v2905_v53, %v3760_v63  ;;  %v1070_v33 = vmul.f32 0.01, %v924_v0  ;;  %v847_v63 = vadd.f32 %v3774_v39, %v3614_v30  ;;  %v4449_v32 = vld [vmem:[#allocation21_spill] sm:$0xff] }
 0x116   :  { %v926_v46 = vpop.f32.mrf.mxu0  ;;  %2748 = vmatpush3.bf16.msra.mxu1 %v1167_v40  ;;  %v1136_v26 = vmax.f32 %v932_v49, %v1072_v45  ;;  %v1173_v34 = vpack.c.bf16 %v1121_v38, %v1120_v59  ;;  %v1052_v47 = vmul.f32 0.01, %v852_v21  ;;  %v844_v28 = vadd.f32 %v4444_v19, %v4443_v48  ;;  %v4456_v48 = vld [vmem:[#allocation7_spill] sm:$0xff] }
 0x117   :  { %v1073_v60 = vmul.f32 0.01, %v935_v20  ;;  %v927_v16 = vadd.f32 %v926_v46, %v3798_v8  ;;  %2749 = vmatprep.subr.bf16.mxu1 %v1174_v52  ;;  %v1118_v8 = vmax.f32 %v860_v42, %v1054_v24  ;;  %v1134_v61 = vmax.f32 %v924_v0, %v1070_v33  ;;  %v4451_v46 = vld [vmem:[#allocation8_spill] sm:$0xff]  ;;  %v4452_v33 = vld [vmem:[#allocation10_spill] sm:$0xff] }
 0x118   :  { %v3915_v55 = vpop.f32.mrf.mxu0  ;;  %v1117_v25 = vmax.f32 %v855_v9, %v1053_v41  ;;  %v1051_v2 = vmul.f32 0.01, %v847_v63  ;;  %v1116_v37 = vmax.f32 %v852_v21, %v1052_v47  ;;  %v1050_v11 = vmul.f32 0.01, %v844_v28  ;;  %v4453_v41 = vld [vmem:[#allocation12_spill] sm:$0xff] }
 0x119   :  { %v1137_v56 = vmax.f32 %v935_v20, %v1073_v60  ;;  %v1071_v23 = vmul.f32 0.01, %v927_v16  ;;  %v1172_v4 = vpack.c.bf16 %v1119_v6, %v1118_v8  ;;  %v2638_v17 = vcombine.low %v4448_v57, %v4448_v57  ;;  %v4457_v8 = vld [vmem:[#allocation14_spill] sm:$0xff] }
 0x11a   :  { %v3919_v62 = vpop.f32.mrf.mxu0  ;;  %2750 = vmatpush3.bf16.msra.mxu1 %v1166_v7  ;;  %v1115_v31 = vmax.f32 %v847_v63, %v1051_v2  ;;  %v1171_v51 = vpack.c.bf16 %v1117_v25, %v1116_v37  ;;  %v1114_v5 = vmax.f32 %v844_v28, %v1050_v11  ;;  %v2641_v0 = vcombine.high %v3933_v27, %v3933_v27  ;;  %v4454_v7 = vld [vmem:[#allocation13_spill] sm:$0xff]  ;;  %v4459_v37 = vld [vmem:[#allocation11_spill] sm:$0xff] }
 0x11b   :  { %v3921_v18 = vpack.c.bf16 %v1137_v56, %v1136_v26  ;;  %v1135_v30 = vmax.f32 %v927_v16, %v1071_v23  ;;  %2751 = vmatprep.subr.bf16.mxu1 %v1173_v34  ;;  %v4455_v56 = vld [vmem:[#allocation15_spill] sm:$0xff] }
 0x11c   :  { %v2909_v39 = vpop.f32.mrf.mxu0  ;;  %v1170_v14 = vpack.c.bf16 %v1115_v31, %v1114_v5 }
 0x11d   :  { %v3923_v35 = vpack.c.bf16 %v1135_v30, %v1134_v61  ;;  %v4458_v30 = vld [vmem:[#allocation16_spill] sm:$0xff] }
 0x11e   :  { %v3925_v54 = vpop.f32.mrf.mxu0  ;;  %2752 = vmatpush3.bf16.msra.mxu1 %v4445_v36 }
 0x11f   :  { %2753 = vmatprep.subr.bf16.mxu1 %v1172_v4 }
 0x120   :  { %v2912_v50 = vpop.f32.mrf.mxu0 }
 0x121   :  { %v964_v60 = vadd.f32 %v2912_v50, %v4452_v33  ;;  %v4460_v50 = vld [vmem:[#allocation18_spill] sm:$0xff] }
 0x122   :  { %v955_v3 = vpop.f32.mrf.mxu0  ;;  %2754 = vmatpush3.bf16.msra.mxu1 %v4446_v1  ;;  %v951_v31 = vadd.f32 %v2909_v39, %v4460_v50 }
 0x123   :  { %2755 = vmatprep.subr.bf16.mxu1 %v1171_v51  ;;  %v1080_v28 = vmul.f32 0.01, %v964_v60  ;;  %v956_v61 = vadd.f32 %v955_v3, %v4457_v8 }
 0x124   :  { %v2913_v10 = vpop.f32.mrf.mxu0  ;;  %v1077_v39 = vmul.f32 0.01, %v951_v31 }
 0x125   :  { %v967_v21 = vadd.f32 %v2913_v10, %v4450_v22  ;;  %v4461_v10 = vld [vmem:[#allocation22_spill] sm:$0xff] }
 0x126   :  { %v958_v49 = vpop.f32.mrf.mxu0  ;;  %2756 = vmatpush3.bf16.msra.mxu1 %v4447_v43 }
 0x127   :  { %2757 = vmatprep.subr.bf16.mxu1 %v1170_v14  ;;  %v1081_v6 = vmul.f32 0.01, %v967_v21  ;;  %v959_v26 = vadd.f32 %v958_v49, %v4454_v7 }
 0x128   :  { %v3935_v42 = vpop.f32.mrf.mxu0 }
 0x129   :  { %v1145_v51 = vmax.f32 %v967_v21, %v1081_v6  ;;  %v1079_v1 = vmul.f32 0.01, %v959_v26  ;;  %v4464_v21 = vld [vmem:[#allocation26_spill] sm:$0xff] }
 0x12a   :  { %v3939_v15 = vpop.f32.mrf.mxu0  ;;  %2758 = vmatpush3.bf16.msra.mxu1 %v4449_v32  ;;  %v1144_v32 = vmax.f32 %v964_v60, %v1080_v28 }
 0x12c   :  { %v3944_v9 = vpop.f32.mrf.mxu0 }
 0x12d   :  { %1249 = vmatmul.mubr.bf16.vlgmr.msra.gmra.mxu1 %v2638_v17  ;;  %v4462_v17 = vld [vmem:[#allocation17_spill] sm:$0xff] }
 0x12e   :  { %v3946_v38 = vpop.f32.mrf.mxu0  ;;  %1288 = vmatprep.mubr.bf16.mxu1 %v2641_v0  ;;  %v948_v3 = vadd.f32 %v3915_v55, %v4462_v17  ;;  %v1078_v0 = vmul.f32 0.01, %v956_v61 }
 0x130   :  { %v2920_v44 = vpop.f32.mrf.mxu0  ;;  %v1076_v60 = vmul.f32 0.01, %v948_v3 }
 0x132   :  { %v3948_v53 = vpop.f32.mrf.mxu0 }
 0x134   :  { %v2921_v13 = vpop.f32.mrf.mxu0 }
 0x136   :  { %v990_v29 = vpop.f32.mrf.mxu0 }
 0x138   :  { %v2924_v40 = vpop.f32.mrf.mxu0 }
 0x139   :  { %v1012_v25 = vadd.f32 %v2924_v40, %v4458_v30 }
 0x13a   :  { %v1003_v45 = vpop.f32.mrf.mxu0 }
 0x13b   :  { %v1092_v40 = vmul.f32 0.01, %v1012_v25 }
 0x13c   :  { %v2925_v20 = vpop.f32.mrf.mxu0 }
 0x13d   :  { %v1015_v23 = vadd.f32 %v2925_v20, %v4455_v56  ;;  %v4463_v20 = vld [vmem:[#allocation20_spill] sm:$0xff] }
 0x13e   :  { %v1006_v52 = vpop.f32.mrf.mxu0  ;;  %v1004_v22 = vadd.f32 %v1003_v45, %v4463_v20  ;;  %v1142_v45 = vmax.f32 %v956_v61, %v1078_v0  ;;  %v4473_v20 = vld [vmem:[#allocation34_spill] sm:$0xff] }
 0x13f   :  { %v1093_v5 = vmul.f32 0.01, %v1015_v23  ;;  %v1007_v14 = vadd.f32 %v1006_v52, %v4461_v10  ;;  %v1143_v52 = vmax.f32 %v959_v26, %v1079_v1 }
 0x140   :  { %v2928_v59 = vpop.f32.mrf.mxu0  ;;  %v1090_v28 = vmul.f32 0.01, %v1004_v22 }
 0x141   :  { %v1028_v24 = vadd.f32 %v2928_v59, %v4451_v46  ;;  %v1157_v7 = vmax.f32 %v1015_v23, %v1093_v5  ;;  %v1091_v56 = vmul.f32 0.01, %v1007_v14  ;;  %v1184_v26 = vpack.c.bf16 %v1143_v52, %v1142_v45 }
 0x142   :  { %v1019_v16 = vpop.f32.mrf.mxu0  ;;  %v1154_v50 = vmax.f32 %v1004_v22, %v1090_v28  ;;  %v972_v22 = vadd.f32 %v3939_v15, %v4473_v20  ;;  %v2640_v15 = vcombine.low %v3933_v27, %v3933_v27 }
 0x143   :  { %v1020_v63 = vadd.f32 %v1019_v16, %v4453_v41  ;;  %v1096_v47 = vmul.f32 0.01, %v1028_v24  ;;  %v943_v16 = vadd.f32 %v3925_v54, %v4464_v21  ;;  %v1185_v41 = vpack.c.bf16 %v1145_v51, %v1144_v32  ;;  %v4470_v51 = vld [vmem:[#allocation33_spill] sm:$0xff] }
 0x144   :  { %v2929_v34 = vpop.f32.mrf.mxu0  ;;  %v1141_v54 = vmax.f32 %v951_v31, %v1077_v39  ;;  %v983_v31 = vadd.f32 %v3944_v9, %v4470_v51  ;;  %v1082_v21 = vmul.f32 0.01, %v972_v22  ;;  %v3055_v51 = vld [vmem:[%s4403_s5 + $0x88] sm:$0xff]  }
 0x145   :  { %v1031_v19 = vadd.f32 %v2929_v34, %v4456_v48  ;;  %v1094_v4 = vmul.f32 0.01, %v1020_v63  ;;  %v1160_v49 = vmax.f32 %v1028_v24, %v1096_v47  ;;  %v4465_v24 = vld [vmem:[#allocation28_spill] sm:$0xff]  ;;  %v4466_v34 = vld [vmem:[#allocation23_spill] sm:$0xff]  ;;  %v1075_v8 = vmul.f32 0.01, %v943_v16 }
 0x146   :  { %v1022_v2 = vpop.f32.mrf.mxu0  ;;  %v999_v6 = vadd.f32 %v2921_v13, %v4465_v24  ;;  %v940_v47 = vadd.f32 %v3919_v62, %v4466_v34  ;;  %v4468_v13 = vld [vmem:[#allocation31_spill] sm:$0xff]  ;;  %v4469_v62 = vld [vmem:[#allocation30_spill] sm:$0xff] }
 0x147   :  { %v1097_v36 = vmul.f32 0.01, %v1031_v19  ;;  %v1023_v11 = vadd.f32 %v1022_v2, %v4459_v37  ;;  %v1158_v59 = vmax.f32 %v1020_v63, %v1094_v4  ;;  %v4467_v63 = vld [vmem:[#allocation27_spill] sm:$0xff]  ;;  %v991_v23 = vadd.f32 %v990_v29, %v4468_v13  ;;  %v3043_v13 = vld [vmem:[%s4403_s5 + $0x28] sm:$0xff]  }
 0x148   :  { %v996_v48 = vadd.f32 %v2920_v44, %v4467_v63  ;;  %v1089_v30 = vmul.f32 0.01, %v999_v6  ;;  %v1155_v2 = vmax.f32 %v1007_v14, %v1091_v56  ;;  %v1074_v37 = vmul.f32 0.01, %v940_v47  ;;  %v4471_v14 = vld [vmem:[#allocation32_spill] sm:$0xff] }
 0x149   :  { %v1161_v43 = vmax.f32 %v1031_v19, %v1097_v36  ;;  %v1095_v57 = vmul.f32 0.01, %v1023_v11  ;;  %v1156_v19 = vmax.f32 %v1012_v25, %v1092_v40  ;;  %v1140_v36 = vmax.f32 %v948_v3, %v1076_v60  ;;  %v4472_v3 = vld [vmem:[#allocation35_spill] sm:$0xff] }
 0x14a   :  { %v988_v61 = vadd.f32 %v3948_v53, %v4469_v62  ;;  %v1139_v25 = vmax.f32 %v943_v16, %v1075_v8  ;;  %v1153_v1 = vmax.f32 %v999_v6, %v1089_v30  ;;  %v1087_v5 = vmul.f32 0.01, %v991_v23  ;;  %v3040_v8 = vld [vmem:[%s4403_s5 + $0x10] sm:$0xff]   ;;  %v3042_v30 = vld [vmem:[%s4403_s5 + $0x20] sm:$0xff]  }
 0x14b   :  { %v1159_v46 = vmax.f32 %v1023_v11, %v1095_v57  ;;  %v1193_v33 = vpack.c.bf16 %v1161_v43, %v1160_v49  ;;  %v1191_v4 = vpack.c.bf16 %v1157_v7, %v1156_v19  ;;  %v1088_v11 = vmul.f32 0.01, %v996_v48  ;;  %v3050_v62 = vld [vmem:[%s4403_s5 + $0x60] sm:$0xff]  }
 0x14c   :  { %v1183_v44 = vpack.c.bf16 %v1141_v54, %v1140_v36  ;;  %v1190_v10 = vpack.c.bf16 %v1155_v2, %v1154_v50  ;;  %v1138_v29 = vmax.f32 %v940_v47, %v1074_v37  ;;  %v980_v49 = vadd.f32 %v3935_v42, %v4471_v14  ;;  %v3039_v54 = vld [vmem:[%s4403_s5 + $0x8] sm:$0xff]   ;;  %v3045_v2 = vld [vmem:[%s4403_s5 + $0x38] sm:$0xff]   ;;  %v3048_v37 = vld [vmem:[%s4403_s5 + $0x50] sm:$0xff]  }
 0x14d   :  { %2765 = vmatprep.subr.bf16.mxu1 %v1193_v33  ;;  %v1192_v55 = vpack.c.bf16 %v1159_v46, %v1158_v59  ;;  %v1152_v43 = vmax.f32 %v996_v48, %v1088_v11  ;;  %v1086_v57 = vmul.f32 0.01, %v988_v61  ;;  %v1085_v53 = vmul.f32 0.01, %v983_v31  ;;  %v3047_v36 = vld [vmem:[%s4403_s5 + $0x48] sm:$0xff]   ;;  %v3049_v11 = vld [vmem:[%s4403_s5 + $0x58] sm:$0xff]  }
 0x14e   :  { %2766 = vmatpush3.bf16.msra.mxu1 %v1185_v41  ;;  %v1182_v17 = vpack.c.bf16 %v1139_v25, %v1138_v29  ;;  %v975_v32 = vadd.f32 %v3946_v38, %v4472_v3  ;;  %v1151_v0 = vmax.f32 %v991_v23, %v1087_v5  ;;  %v1084_v9 = vmul.f32 0.01, %v980_v49  ;;  %v3044_v23 = vld [vmem:[%s4403_s5 + $0x30] sm:$0xff]   ;;  %v3054_v25 = vld [vmem:[%s4403_s5 + $0x80] sm:$0xff]   ;;  %v3059_v14 = vld [vmem:[%s4403_s5 + $0xa8] sm:$0xff]  }
 0x14f   :  { %2767 = vmatprep.subr.bf16.mxu1 %v1192_v55  ;;  %v1189_v40 = vpack.c.bf16 %v1153_v1, %v1152_v43  ;;  %v1150_v59 = vmax.f32 %v988_v61, %v1086_v57  ;;  %v1149_v46 = vmax.f32 %v983_v31, %v1085_v53  ;;  %v1146_v38 = vmax.f32 %v972_v22, %v1082_v21  ;;  %v1200_v55 = vpop.permute.xlu0 %1199  ;;  %v3051_v61 = vld [vmem:[%s4403_s5 + $0x68] sm:$0xff]   ;;  %v3052_v50 = vld [vmem:[%s4403_s5 + $0x70] sm:$0xff]   ;;  %v3057_v1 = vld [vmem:[%s4403_s5 + $0x98] sm:$0xff]  }
 0x150   :  { %v1083_v33 = vmul.f32 0.01, %v975_v32  ;;  %v1148_v39 = vmax.f32 %v980_v49, %v1084_v9  ;;  %v3056_v31 = vld [vmem:[%s4403_s5 + $0x90] sm:$0xff]   ;;  %v3058_v5 = vld [vmem:[%s4403_s5 + $0xa0] sm:$0xff]   ;;  %v3061_v53 = vld [vmem:[%s4403_s5 + $0xb8] sm:$0xff]  }
 0x151   :  { %v1188_v42 = vpack.c.bf16 %v1151_v0, %v1150_v59  ;;  %v3060_v49 = vld [vmem:[%s4403_s5 + $0xb0] sm:$0xff]   ;;  %v3062_v3 = vld [vmem:[%s4403_s5 + $0xc0] sm:$0xff]  }
 0x152   :  { %2768 = vmatpush3.bf16.msra.mxu1 %v1184_v26  ;;  %v1147_v16 = vmax.f32 %v975_v32, %v1083_v33  ;;  %v1187_v41 = vpack.c.bf16 %v1149_v46, %v1148_v39  ;;  %v3041_v26 = vld [vmem:[%s4403_s5 + $0x18] sm:$0xff]   ;;  %v3064_v9 = vld [vmem:[%s4403_s5 + $0xd0] sm:$0xff]   ;;  %v3066_v33 = vld [vmem:[%s4403_s5 + $0xe0] sm:$0xff]  }
 0x153   :  { %2769 = vmatprep.subr.bf16.mxu1 %v1191_v4  ;;  %v3046_v4 = vld [vmem:[%s4403_s5 + $0x40] sm:$0xff]   ;;  %v4074_v29 = vpop.permute.xlu0 %1584  ;;  %v3065_v46 = vld [vmem:[%s4403_s5 + $0xd8] sm:$0xff]  }
 0x154   :  { %v1186_v52 = vpack.c.bf16 %v1147_v16, %v1146_v38  ;;  %v3067_v16 = vld [vmem:[%s4403_s5 + $0xe8] sm:$0xff]  }
 0x156   :  { %2770 = vmatpush3.bf16.msra.mxu1 %v1183_v44  ;;  %v3053_v44 = vld [vmem:[%s4403_s5 + $0x78] sm:$0xff]  }
 0x157   :  { %2771 = vmatprep.subr.bf16.mxu1 %v1190_v10  ;;  %v4070_v10 = vpop.permute.xlu1 %1579  ;;  %v4086_v57 = vpop.permute.xlu0 %1504 }
 0x15a   :  { %2772 = vmatpush3.bf16.msra.mxu1 %v1182_v17 }
 0x15b   :  { %2773 = vmatprep.subr.bf16.mxu1 %v1189_v40  ;;  %v4082_v43 = vpop.permute.xlu1 %1499  ;;  %v4096_v32 = vpop.permute.xlu0 %1574  ;;  %v3063_v40 = vld [vmem:[%s4403_s5 + $0xc8] sm:$0xff]  }
 0x15e   :  { %2774 = vmatpush3.bf16.msra.mxu1 %v3921_v18  ;;  %v3038_v18 = vld [vmem:[%s4403_s5] sm:$0xff]  }
 0x15f   :  { %2775 = vmatprep.subr.bf16.mxu1 %v1188_v42  ;;  %v4088_v17 = vpop.permute.xlu1 %1569  ;;  %v4108_v20 = vpop.permute.xlu0 %1494 }
 0x162   :  { %2776 = vmatpush3.bf16.msra.mxu1 %v3923_v35 }
 0x163   :  { %2777 = vmatprep.subr.bf16.mxu1 %v1187_v41  ;;  %v4100_v0 = vpop.permute.xlu1 %1489  ;;  %v4114_v59 = vpop.permute.xlu0 %1564  ;;  %v3068_v41 = vld [vmem:[%s4403_s5 + $0xf0] sm:$0xff]  }
 0x166   :  { %2778 = vmatpush3.bf16.msra.mxu1 %v3893_v12 }
 0x167   :  { %2779 = vmatprep.subr.bf16.mxu1 %v1186_v52  ;;  %v4110_v22 = vpop.permute.xlu1 %1559  ;;  %v4126_v39 = vpop.permute.xlu0 %1484 }
 0x16a   :  { %2780 = vmatpush3.bf16.msra.mxu1 %v3905_v58 }
 0x16b   :  { %v4122_v42 = vpop.permute.xlu1 %1479  ;;  %v4136_v38 = vpop.permute.xlu0 %1554 }
 0x16d   :  { %1289 = vmatmul.mubr.bf16.vlgmr.msra.gmra.mxu1 %v2640_v15  ;;  %v3069_v15 = vld [vmem:[%s4403_s5 + $0xf8] sm:$0xff]  }
 0x16e   :  { %2932 = vmatprep.mubr.msk.bf16.mxu1 %vm1907_vm2, %v3038_v18 }
 0x16f   :  { %v4128_v21 = vpop.permute.xlu1 %1549  ;;  %v4145_v18 = vpop.permute.xlu0 %1474 }
 0x173   :  { %v4140_v52 = vpop.permute.xlu1 %1469 }
 0x1ed   :  { %v2759_v35 = vpop.f32.mrf.mxu1 }
 0x1ef   :  { %v2760_v24 = vpop.f32.mrf.mxu1 }
 0x1f0   :  { %v2761_v56 = vadd.f32 %v2760_v24, %v2759_v35  ;;  %v4147_v35 = vpop.permute.xlu1 %1539  ;;  %v4150_v24 = vpop.permute.xlu0 %1544 }
 0x1f1   :  { %v2762_v6 = vpop.f32.mrf.mxu1 }
 0x1f2   :  { %v1251_v34 = vadd.f32 %v2761_v56, %v1200_v55 }
 0x1f3   :  { %v2763_v7 = vpop.f32.mrf.mxu1 }
 0x1f4   :  { %v1460_v6 = vpop.permute.xlu1 %1459  ;;  %v1465_v7 = vpop.permute.xlu0 %1464 }
 0x1f8   :  { %v4152_v56 = vpop.permute.xlu1 %1529 }
 0x1fc   :  { %v1450_v55 = vpop.permute.xlu1 %1449 }
 0x22d   :  { %v2781_v12 = vpop.f32.mrf.mxu1 }
 0x22f   :  { %v2782_v60 = vpop.f32.mrf.mxu1 }
 0x230   :  { %v2783_v27 = vadd.f32 %v2782_v60, %v2781_v12  ;;  %v4154_v12 = vpop.permute.xlu0 %1534 }
 0x231   :  { %v2784_v47 = vpop.f32.mrf.mxu1 }
 0x232   :  { %v1291_v58 = vadd.f32 %v2783_v27, %v1251_v34  ;;  %v4156_v34 = vpop.permute.xlu1 %1519 }
 0x233   :  { %v2785_v45 = vpop.f32.mrf.mxu1 }
 0x234   :  { %v1296_v63 = vmul.f32 0.01, %v1291_v58  ;;  %v1455_v60 = vpop.permute.xlu0 %1454 }
 0x236   :  { %v1297_v48 = vmax.f32 %v1291_v58, %v1296_v63  ;;  %v1440_v47 = vpop.permute.xlu1 %1439 }
 0x238   :  { %v1298_v19 = vpack.c.bf16 %v1297_v48, %v1297_v48  ;;  %v4158_v27 = vpop.permute.xlu0 %1524  ;;  %v4167_v48 = vld [vmem:[%s4405_s7] sm:$0xff] }
 0x239   :  { %4475 = vst [vmem:[#allocation29_spill] sm:$0xff] %v4167_v48 }
 0x23a   :  { %2997 = vmatprep.subr.msk.bf16.mxu1 %vm2004_vm3, %v1298_v19  ;;  %v2006_v28 = vsel %vm2004_vm3, %v1298_v19, 0  ;;  %v4160_v45 = vpop.permute.xlu1 %1509 }
 0x23b   :  { %2931 = vmatpush3.bf16.msra.mxu1 %v2006_v28  ;;  %4474 = vst [vmem:[#allocation6_spill] sm:$0xff] %v4160_v45  ;;  %v2707_v28 = vcombine.high %v4167_v48, %v4167_v48 }
 0x23c   :  { %v1445_v58 = vpop.permute.xlu0 %1444 }
 0x23d   :  { %2511 = vmatprep.mubr.bf16.mxu0 %v2707_v28 }
 0x23e   :  { %2933 = vmatmul.mubr.msk.bf16.vlgmr.msra.gmra.mxu1 %vm1907_vm2, %v3039_v54  ;;  %v1430_v19 = vpop.permute.xlu1 %1429 }
 0x23f   :  { %2936 = vmatprep.mubr.msk.bf16.mxu1 %vm1907_vm2, %v3040_v8 }
 0x240   :  { %v4162_v63 = vpop.permute.xlu0 %1514 }
 0x242   :  { %v4171_v8 = vpop.permute.xlu1 %1739 }
 0x243   :  { %4476 = vst [vmem:[#allocation24_spill] sm:$0xff] %v4171_v8 }
 0x244   :  { %v1435_v54 = vpop.permute.xlu0 %1434 }
 0x246   :  { %2937 = vmatmul.mubr.msk.bf16.gmra.mxu1 %vm1907_vm2, %v3041_v26 }
 0x247   :  { %2940 = vmatprep.mubr.msk.bf16.mxu1 %vm1907_vm2, %v3042_v30  ;;  %v4175_v30 = vpop.permute.xlu1 %1659 }
 0x248   :  { %v4173_v26 = vpop.permute.xlu0 %1744  ;;  %4478 = vst [vmem:[#allocation19_spill] sm:$0xff] %v4175_v30 }
 0x249   :  { %4477 = vst [vmem:[#allocation25_spill] sm:$0xff] %v4173_v26 }
 0x24e   :  { %2941 = vmatmul.mubr.msk.bf16.gmra.mxu1 %vm1907_vm2, %v3043_v13  ;;  %v4177_v13 = vpop.permute.xlu0 %1664 }
 0x24f   :  { %2944 = vmatprep.mubr.msk.bf16.mxu1 %vm1907_vm2, %v3044_v23  ;;  %4479 = vst [vmem:[#allocation5_spill] sm:$0xff] %v4177_v13  ;;  %v4179_v23 = vpop.permute.xlu1 %1729 }
 0x250   :  { %4480 = vst [vmem:[#allocation21_spill] sm:$0xff] %v4179_v23 }
 0x256   :  { %2945 = vmatmul.mubr.msk.bf16.gmra.mxu1 %vm1907_vm2, %v3045_v2  ;;  %v4181_v2 = vpop.permute.xlu0 %1734 }
 0x257   :  { %2948 = vmatprep.mubr.msk.bf16.mxu1 %vm1907_vm2, %v3046_v4  ;;  %4481 = vst [vmem:[#allocation9_spill] sm:$0xff] %v4181_v2  ;;  %v4183_v4 = vpop.permute.xlu1 %1649 }
 0x258   :  { %4482 = vst [vmem:[#allocation8_spill] sm:$0xff] %v4183_v4 }
 0x25e   :  { %2949 = vmatmul.mubr.msk.bf16.gmra.mxu1 %vm1907_vm2, %v3047_v36  ;;  %v4185_v36 = vpop.permute.xlu0 %1654 }
 0x25f   :  { %2952 = vmatprep.mubr.msk.bf16.mxu1 %vm1907_vm2, %v3048_v37  ;;  %4483 = vst [vmem:[#allocation10_spill] sm:$0xff] %v4185_v36  ;;  %v4187_v37 = vpop.permute.xlu1 %1719 }
 0x260   :  { %4484 = vst [vmem:[#allocation12_spill] sm:$0xff] %v4187_v37 }
 0x266   :  { %2953 = vmatmul.mubr.msk.bf16.gmra.mxu1 %vm1907_vm2, %v3049_v11 }
 0x267   :  { %2956 = vmatprep.mubr.msk.bf16.mxu1 %vm1907_vm2, %v3050_v62 }
 0x26e   :  { %2957 = vmatmul.mubr.msk.bf16.gmra.mxu1 %vm1907_vm2, %v3051_v61 }
 0x26f   :  { %2960 = vmatprep.mubr.msk.bf16.mxu1 %vm1907_vm2, %v3052_v50 }
 0x276   :  { %2961 = vmatmul.mubr.msk.bf16.gmra.mxu1 %vm1907_vm2, %v3053_v44  ;;  %v4189_v44 = vpop.permute.xlu0 %1724 }
 0x277   :  { %2964 = vmatprep.mubr.msk.bf16.mxu1 %vm1907_vm2, %v3054_v25  ;;  %4485 = vst [vmem:[#allocation13_spill] sm:$0xff] %v4189_v44 }
 0x27e   :  { %2965 = vmatmul.mubr.msk.bf16.gmra.mxu1 %vm1907_vm2, %v3055_v51 }
 0x27f   :  { %2968 = vmatprep.mubr.msk.bf16.mxu1 %vm1907_vm2, %v3056_v31 }
 0x286   :  { %2969 = vmatmul.mubr.msk.bf16.gmra.mxu1 %vm1907_vm2, %v3057_v1  ;;  %v4191_v1 = vpop.permute.xlu1 %1639 }
 0x287   :  { %2972 = vmatprep.mubr.msk.bf16.mxu1 %vm1907_vm2, %v3058_v5  ;;  %4486 = vst [vmem:[#allocation15_spill] sm:$0xff] %v4191_v1 }
 0x28e   :  { %2973 = vmatmul.mubr.msk.bf16.gmra.mxu1 %vm1907_vm2, %v3059_v14 }
 0x28f   :  { %2976 = vmatprep.mubr.msk.bf16.mxu1 %vm1907_vm2, %v3060_v49 }
 0x296   :  { %2977 = vmatmul.mubr.msk.bf16.gmra.mxu1 %vm1907_vm2, %v3061_v53 }
 0x297   :  { %2980 = vmatprep.mubr.msk.bf16.mxu1 %vm1907_vm2, %v3062_v3 }
 0x29e   :  { %2981 = vmatmul.mubr.msk.bf16.gmra.mxu1 %vm1907_vm2, %v3063_v40 }
 0x29f   :  { %2984 = vmatprep.mubr.msk.bf16.mxu1 %vm1907_vm2, %v3064_v9 }
 0x2a6   :  { %2985 = vmatmul.mubr.msk.bf16.gmra.mxu1 %vm1907_vm2, %v3065_v46 }
 0x2a7   :  { %2988 = vmatprep.mubr.msk.bf16.mxu1 %vm1907_vm2, %v3066_v33 }
 0x2ae   :  { %2989 = vmatmul.mubr.msk.bf16.gmra.mxu1 %vm1907_vm2, %v3067_v16  ;;  %v4193_v16 = vpop.permute.xlu0 %1644 }
 0x2af   :  { %2992 = vmatprep.mubr.msk.bf16.mxu1 %vm1907_vm2, %v3068_v41  ;;  %4487 = vst [vmem:[#allocation7_spill] sm:$0xff] %v4193_v16 }
 0x2b6   :  { %2993 = vmatmul.mubr.msk.bf16.gmra.mxu1 %vm1907_vm2, %v3069_v15 }
 0x2fe   :  { %v2934_v11 = vpop.f32.mrf.mxu1 }
 0x2ff   :  { %v2051_v62 = vadd.f32 %v2934_v11, %v1440_v47 }
 0x300   :  { %v2042_v61 = vpop.f32.mrf.mxu1 }
 0x301   :  { %v2043_v50 = vadd.f32 %v2042_v61, %v1430_v19  ;;  %v2299_v51 = vmul.f32 0.01, %v2051_v62 }
 0x302   :  { %v2935_v25 = vpop.f32.mrf.mxu1 }
 0x303   :  { %v2054_v31 = vadd.f32 %v2935_v25, %v1445_v58  ;;  %v2297_v14 = vmul.f32 0.01, %v2043_v50  ;;  %v2363_v40 = vmax.f32 %v2051_v62, %v2299_v51  ;;  %v4197_v58 = vpop.permute.xlu1 %1709 }
 0x304   :  { %v2045_v5 = vpop.f32.mrf.mxu1  ;;  %4489 = vst [vmem:[#allocation16_spill] sm:$0xff] %v4197_v58 }
 0x305   :  { %v2300_v49 = vmul.f32 0.01, %v2054_v31  ;;  %v2046_v53 = vadd.f32 %v2045_v5, %v1435_v54  ;;  %v2361_v15 = vmax.f32 %v2043_v50, %v2297_v14 }
 0x306   :  { %v2938_v3 = vpop.f32.mrf.mxu1 }
 0x307   :  { %v2364_v9 = vmax.f32 %v2054_v31, %v2300_v49  ;;  %v2298_v46 = vmul.f32 0.01, %v2046_v53  ;;  %v2067_v33 = vadd.f32 %v2938_v3, %v1460_v6  ;;  %v4201_v6 = vpop.permute.xlu0 %1714 }
 0x308   :  { %v2058_v41 = vpop.f32.mrf.mxu1  ;;  %4491 = vst [vmem:[#allocation18_spill] sm:$0xff] %v4201_v6 }
 0x309   :  { %v4195_v47 = vpack.c.bf16 %v2364_v9, %v2363_v40  ;;  %v2362_v19 = vmax.f32 %v2046_v53, %v2298_v46  ;;  %v2059_v28 = vadd.f32 %v2058_v41, %v1450_v55  ;;  %v2303_v25 = vmul.f32 0.01, %v2067_v33  ;;  %v4203_v40 = vpop.permute.xlu1 %1629 }
 0x30a   :  { %v2939_v11 = vpop.f32.mrf.mxu1  ;;  %4492 = vst [vmem:[#allocation22_spill] sm:$0xff] %v4203_v40 }
 0x30b   :  { %4488 = vst [vmem:[#allocation14_spill] sm:$0xff] %v4195_v47  ;;  %v4199_v61 = vpack.c.bf16 %v2362_v19, %v2361_v15  ;;  %v2070_v54 = vadd.f32 %v2939_v11, %v1465_v7  ;;  %v2301_v62 = vmul.f32 0.01, %v2059_v28  ;;  %v2367_v3 = vmax.f32 %v2067_v33, %v2303_v25  ;;  %v4209_v7 = vpop.permute.xlu0 %1634 }
 0x30c   :  { %v2061_v5 = vpop.f32.mrf.mxu1  ;;  %4495 = vst [vmem:[#allocation26_spill] sm:$0xff] %v4209_v7 }
 0x30d   :  { %4490 = vst [vmem:[#allocation11_spill] sm:$0xff] %v4199_v61  ;;  %v2304_v51 = vmul.f32 0.01, %v2070_v54  ;;  %v2062_v31 = vadd.f32 %v2061_v5, %v1455_v60  ;;  %v2365_v53 = vmax.f32 %v2059_v28, %v2301_v62  ;;  %v4211_v60 = vpop.permute.xlu1 %1699 }
 0x30e   :  { %v2942_v49 = vpop.f32.mrf.mxu1  ;;  %4496 = vst [vmem:[#allocation28_spill] sm:$0xff] %v4211_v60 }
 0x30f   :  { %v2368_v50 = vmax.f32 %v2070_v54, %v2304_v51  ;;  %v2302_v14 = vmul.f32 0.01, %v2062_v31  ;;  %v4213_v33 = vpop.permute.xlu0 %1704 }
 0x310   :  { %v2074_v55 = vpop.f32.mrf.mxu1  ;;  %4497 = vst [vmem:[#allocation23_spill] sm:$0xff] %v4213_v33 }
 0x311   :  { %v4205_v9 = vpack.c.bf16 %v2368_v50, %v2367_v3  ;;  %v2366_v46 = vmax.f32 %v2062_v31, %v2302_v14  ;;  %v4215_v54 = vpop.permute.xlu1 %1619 }
 0x312   :  { %v2943_v41 = vpop.f32.mrf.mxu1 }
 0x313   :  { %4493 = vst [vmem:[#allocation17_spill] sm:$0xff] %v4205_v9  ;;  %v4207_v15 = vpack.c.bf16 %v2366_v46, %v2365_v53  ;;  %v4219_v62 = vpop.permute.xlu0 %1624  ;;  %v4249_v26 = vadd.f32 %v2943_v41, %v4126_v39 }
 0x314   :  { %v2077_v19 = vpop.f32.mrf.mxu1 }
 0x315   :  { %4494 = vst [vmem:[#allocation20_spill] sm:$0xff] %v4207_v15  ;;  %v4223_v3 = vpop.permute.xlu1 %1689  ;;  %v4262_v39 = vmul.f32 0.01, %v4249_v26 }
 0x316   :  { %v2946_v11 = vpop.f32.mrf.mxu1  ;;  %4499 = vst [vmem:[#allocation31_spill] sm:$0xff] %v4223_v3 }
 0x317   :  { %v4229_v53 = vpop.permute.xlu0 %1694 }
 0x318   :  { %v2090_v5 = vpop.f32.mrf.mxu1  ;;  %4500 = vst [vmem:[#allocation30_spill] sm:$0xff] %v4229_v53  ;;  %v4246_v53 = vadd.f32 %v2942_v49, %v4122_v42  ;;  %v2099_v42 = vadd.f32 %v2946_v11, %v4082_v43  ;;  %v4276_v11 = vadd.f32 %v2077_v19, %v4145_v18 }
 0x319   :  { %v4233_v60 = vpop.permute.xlu1 %1609 }
 0x31a   :  { %v2947_v25 = vpop.f32.mrf.mxu1  ;;  %v4253_v23 = vmul.f32 0.01, %v4246_v53 }
 0x31b   :  { %v4237_v7 = vpop.permute.xlu0 %1614  ;;  %v2102_v44 = vadd.f32 %v2947_v25, %v4086_v57  ;;  %v2091_v25 = vadd.f32 %v2090_v5, %v4100_v0 }
 0x31c   :  { %v2093_v51 = vpop.f32.mrf.mxu1 }
 0x31d   :  { %v4241_v1 = vpop.permute.xlu1 %1679  ;;  %v2094_v49 = vadd.f32 %v2093_v51, %v4108_v20  ;;  %v2312_v13 = vmul.f32 0.01, %v2102_v44  ;;  %v2309_v61 = vmul.f32 0.01, %v2091_v25 }
 0x31e   :  { %v4217_v28 = vpop.f32.mrf.mxu1  ;;  %4501 = vst [vmem:[#allocation33_spill] sm:$0xff] %v4241_v1  ;;  %v4256_v1 = vadd.f32 %v2074_v55, %v4140_v52 }
 0x31f   :  { %v4243_v16 = vpop.permute.xlu0 %1684  ;;  %v2376_v48 = vmax.f32 %v2102_v44, %v2312_v13 }
 0x320   :  { %v4221_v31 = vpop.f32.mrf.mxu1  ;;  %4502 = vst [vmem:[#allocation32_spill] sm:$0xff] %v4243_v16  ;;  %v4272_v43 = vmul.f32 0.01, %v4256_v1 }
 0x321   :  { %4498 = vst [vmem:[#allocation27_spill] sm:$0xff] %v4221_v31  ;;  %v1600_v37 = vpop.permute.xlu1 %1599 }
 0x322   :  { %v4225_v50 = vpop.f32.mrf.mxu1 }
 0x323   :  { %v1605_v30 = vpop.permute.xlu0 %1604 }
 0x324   :  { %v4227_v14 = vpop.f32.mrf.mxu1 }
 0x325   :  { %v4265_v41 = vpop.permute.xlu1 %1669 }
 0x326   :  { %v4231_v46 = vpop.f32.mrf.mxu1  ;;  %4503 = vst [vmem:[#allocation35_spill] sm:$0xff] %v4265_v41 }
 0x327   :  { %v4282_v41 = vpop.permute.xlu0 %1674 }
 0x328   :  { %v4235_v40 = vpop.f32.mrf.mxu1  ;;  %4504 = vst [vmem:[#allocation34_spill] sm:$0xff] %v4282_v41 }
 0x329   :  { %v1590_v15 = vpop.permute.xlu1 %1589 }
 0x32a   :  { %v2955_v33 = vpop.f32.mrf.mxu1 }
 0x32c   :  { %v4239_v58 = vpop.f32.mrf.mxu1 }
 0x32e   :  { %v2958_v3 = vpop.f32.mrf.mxu1 }
 0x32f   :  { %v2147_v0 = vadd.f32 %v2958_v3, %v4110_v22 }
 0x330   :  { %v2138_v6 = vpop.f32.mrf.mxu1 }
 0x331   :  { %v2139_v31 = vadd.f32 %v2138_v6, %v4128_v21  ;;  %v2306_v21 = vmul.f32 0.01, %v4276_v11  ;;  %v2131_v6 = vadd.f32 %v4231_v46, %v4147_v35 }
 0x332   :  { %v2959_v2 = vpop.f32.mrf.mxu1 }
 0x333   :  { %v2150_v52 = vadd.f32 %v2959_v2, %v4114_v59  ;;  %v2372_v59 = vmax.f32 %v4249_v26, %v4262_v39  ;;  %v2323_v39 = vmul.f32 0.01, %v2147_v0 }
 0x334   :  { %v2141_v4 = vpop.f32.mrf.mxu1 }
 0x335   :  { %v4285_v18 = vadd.f32 %v2141_v4, %v4136_v38  ;;  %v4289_v38 = vadd.f32 %v2955_v33, %v4150_v24 }
 0x336   :  { %v2962_v36 = vpop.f32.mrf.mxu1 }
 0x337   :  { %v2163_v16 = vadd.f32 %v2962_v36, %v4070_v10 }
 0x338   :  { %v2154_v8 = vpop.f32.mrf.mxu1 }
 0x339   :  { %v2155_v57 = vadd.f32 %v2154_v8, %v4088_v17  ;;  %v2327_v20 = vmul.f32 0.01, %v2163_v16  ;;  %v2311_v17 = vmul.f32 0.01, %v2099_v42  ;;  %v2310_v8 = vmul.f32 0.01, %v2094_v49 }
 0x33a   :  { %v2963_v55 = vpop.f32.mrf.mxu1 }
 0x33b   :  { %v2166_v36 = vadd.f32 %v2963_v55, %v4074_v29  ;;  %v2325_v2 = vmul.f32 0.01, %v2155_v57  ;;  %v2324_v29 = vmul.f32 0.01, %v2150_v52  ;;  %v2391_v55 = vmax.f32 %v2163_v16, %v2327_v20 }
 0x33c   :  { %v2157_v5 = vpop.f32.mrf.mxu1  ;;  %v2375_v9 = vmax.f32 %v2099_v42, %v2311_v17  ;;  %v2374_v26 = vmax.f32 %v2094_v49, %v2310_v8  ;;  %v2322_v16 = vmul.f32 0.01, %v4285_v18  ;;  %v1595_v17 = vpop.permute.xlu0 %1594 }
 0x33d   :  { %v2328_v51 = vmul.f32 0.01, %v2166_v36  ;;  %v2158_v10 = vadd.f32 %v2157_v5, %v4096_v32  ;;  %v2389_v5 = vmax.f32 %v2155_v57, %v2325_v2  ;;  %v2388_v4 = vmax.f32 %v2150_v52, %v2324_v29 }
 0x33e   :  { %v2966_v19 = vpop.f32.mrf.mxu1  ;;  %v2432_v44 = vpack.c.bf16 %v2376_v48, %v2375_v9  ;;  %v2321_v48 = vmul.f32 0.01, %v2139_v31  ;;  %v2123_v29 = vadd.f32 %v4235_v40, %v4152_v56 }
 0x33f   :  { %v2392_v47 = vmax.f32 %v2166_v36, %v2328_v51  ;;  %v2326_v22 = vmul.f32 0.01, %v2158_v10  ;;  %v2179_v3 = vadd.f32 %v2966_v19, %v1600_v37  ;;  %v2373_v37 = vmax.f32 %v2091_v25, %v2309_v61 }
 0x340   :  { %v2170_v32 = vpop.f32.mrf.mxu1  ;;  %v2320_v61 = vmul.f32 0.01, %v4289_v38  ;;  %v2319_v51 = vmul.f32 0.01, %v2131_v6  ;;  %v2385_v19 = vmax.f32 %v2139_v31, %v2321_v48 }
 0x341   :  { %v2390_v41 = vmax.f32 %v2158_v10, %v2326_v22  ;;  %v2171_v45 = vadd.f32 %v2170_v32, %v1590_v15  ;;  %v2440_v13 = vpack.c.bf16 %v2392_v47, %v2391_v55  ;;  %v2331_v36 = vmul.f32 0.01, %v2179_v3 }
 0x342   :  { %v2967_v20 = vpop.f32.mrf.mxu1  ;;  %v2387_v47 = vmax.f32 %v2147_v0, %v2323_v39  ;;  %v2431_v24 = vpack.c.bf16 %v2374_v26, %v2373_v37  ;;  %v4505_v0 = vmax.f32 %v4246_v53, %v4253_v23  ;;  %v2118_v23 = vadd.f32 %v4225_v50, %v4158_v27  ;;  %v4507_v37 = vld [vmem:[#allocation27_spill] sm:$0xff] }
 0x343   :  { %v2182_v42 = vadd.f32 %v2967_v20, %v1605_v30  ;;  %2820 = vmatprep.subr.bf16.mxu0 %v2440_v13  ;;  %v2439_v49 = vpack.c.bf16 %v2390_v41, %v2389_v5  ;;  %v2329_v15 = vmul.f32 0.01, %v2171_v45  ;;  %v2126_v30 = vadd.f32 %v4239_v58, %v4154_v12  ;;  %v4506_v20 = vld [vmem:[#allocation6_spill] sm:$0xff] }
 0x344   :  { %v2173_v9 = vpop.f32.mrf.mxu1  ;;  %2821 = vmatpush3.bf16.msra.mxu0 %v2432_v44  ;;  %v2386_v41 = vmax.f32 %v4285_v18, %v2322_v16  ;;  %v2438_v52 = vpack.c.bf16 %v2388_v4, %v2387_v47  ;;  %v2395_v10 = vmax.f32 %v2179_v3, %v2331_v36  ;;  %v2430_v2 = vpack.c.bf16 %v2372_v59, %v4505_v0  ;;  %v4340_v0 = vld [vmem:[%s4405_s7 + $0x8] sm:$0xff]  ;;  %s3097_s7 = smov [#allocation2]  }
 0x345   :  { %v2332_v33 = vmul.f32 0.01, %v2182_v42  ;;  %v2174_v57 = vadd.f32 %v2173_v9, %v1595_v17  ;;  %2822 = vmatprep.subr.bf16.mxu0 %v2439_v49  ;;  %v2393_v12 = vmax.f32 %v2171_v45, %v2329_v15  ;;  %v2384_v53 = vmax.f32 %v4289_v38, %v2320_v61  ;;  %s2566_s20 = sshll.u32 %s3097_s7, 4  ;;  %s2567_s20 = int_to_ptr.vmem [resolvable:$true] %s2566_s20 }
 0x346   :  { %v2970_v25 = vpop.f32.mrf.mxu1  ;;  %v2318_v59 = vmul.f32 0.01, %v2126_v30  ;;  %v2437_v31 = vpack.c.bf16 %v2386_v41, %v2385_v19  ;;  %v2369_v26 = vmax.f32 %v4256_v1, %v4272_v43  ;;  %v2317_v27 = vmul.f32 0.01, %v2123_v29  ;;  %s3074_s21 = scalar_lea.vmem %s2567_s20, 64  ;;  %p3079_p1 = scmp.lt.s32.totalorder %s2567_s20, %s2567_s20 }
 0x347   :  { %v2396_v35 = vmax.f32 %v2182_v42, %v2332_v33  ;;  %v2330_v46 = vmul.f32 0.01, %v2174_v57  ;;  %v2195_v8 = vadd.f32 %v2970_v25, %v4215_v54  ;;  %v2370_v54 = vmax.f32 %v4276_v11, %v2306_v21  ;;  %v4509_v25 = vld [vmem:[#allocation20_spill] sm:$0xff]  ;;  %p3075_p0 = scmp.ne.s32.totalorder %s2567_s20, %s3074_s21  ;;  %p3080_p2 = scmp.lt.s32.totalorder %s3074_s21, %s3074_s21 }
 0x348   :  { %v2186_v55 = vpop.f32.mrf.mxu1  ;;  %2823 = vmatpush3.bf16.msra.mxu0 %v2431_v24  ;;  %v2383_v11 = vmax.f32 %v2131_v6, %v2319_v51  ;;  %v2316_v44 = vmul.f32 0.01, %v2118_v23  ;;  %v2382_v38 = vmax.f32 %v2126_v30, %v2318_v59  ;;  %v2107_v36 = vadd.f32 %v4507_v37, %v4506_v20  ;;  %v4508_v24 = vld [vmem:[#allocation17_spill] sm:$0xff] }
 0x349   :  { %v4305_v58 = vpack.c.bf16 %v2396_v35, %v2395_v10  ;;  %v2394_v18 = vmax.f32 %v2174_v57, %v2330_v46  ;;  %v2187_v22 = vadd.f32 %v2186_v55, %v4233_v60  ;;  %2824 = vmatprep.subr.bf16.mxu0 %v2438_v52  ;;  %v2335_v40 = vmul.f32 0.01, %v2195_v8  ;;  %v4511_v51 = vld [vmem:[#allocation29_spill] sm:$0xff]  ;;  %v4512_v55 = vld [vmem:[#allocation11_spill] sm:$0xff]  ;;  %p3081_p3 = por %p3080_p2, %p3079_p1 }
 0x34a   :  { %v2971_v3 = vpop.f32.mrf.mxu1  ;;  %v2115_v60 = vadd.f32 %v4217_v28, %v4156_v34  ;;  %v2429_v13 = vpack.c.bf16 %v2370_v54, %v2369_v26  ;;  %v2436_v28 = vpack.c.bf16 %v2384_v53, %v2383_v11  ;;  %v2313_v33 = vmul.f32 0.01, %v2107_v36  ;;  %v4513_v26 = vld [vmem:[#allocation5_spill] sm:$0xff] }
 0x34b   :  { %v4312_v56 = vpack.c.bf16 %v2394_v18, %v2393_v12  ;;  %v2198_v45 = vadd.f32 %v2971_v3, %v4219_v62  ;;  %v2333_v50 = vmul.f32 0.01, %v2187_v22  ;;  %v2110_v62 = vadd.f32 %v4227_v14, %v4162_v63  ;;  %v4519_v20 = vld [vmem:[#allocation25_spill] sm:$0xff]  ;;  %p3082_p4 = pnand %p3081_p3, %p3075_p0 }
 0x34c   :  { %v2189_v39 = vpop.f32.mrf.mxu1  ;;  %2825 = vmatpush3.bf16.msra.mxu0 %v2430_v2  ;;  %v2399_v1 = vmax.f32 %v2195_v8, %v2335_v40  ;;  %v2315_v16 = vmul.f32 0.01, %v2115_v60  ;;  %v2380_v14 = vmax.f32 %v2118_v23, %v2316_v44  ;;  %v2377_v52 = vmax.f32 %v2107_v36, %v2313_v33  ;;  %v4510_v8 = vld [vmem:[#allocation14_spill] sm:$0xff] }
 0x34d   :  { %v2336_v32 = vmul.f32 0.01, %v2198_v45  ;;  %v2190_v5 = vadd.f32 %v2189_v39, %v4237_v7  ;;  %2826 = vmatprep.subr.bf16.mxu0 %v2437_v31  ;;  %v2381_v7 = vmax.f32 %v2123_v29, %v2317_v27  ;;  %v2397_v49 = vmax.f32 %v2187_v22, %v2333_v50  ;;  %v4514_v39 = vld [vmem:[#allocation24_spill] sm:$0xff]  ;;  %v4515_v50 = vld [vmem:[#allocation19_spill] sm:$0xff] }
 0x34e   :  { %v4322_v4 = vpop.f32.mrf.mxu1  ;;  %v2314_v6 = vmul.f32 0.01, %v2110_v62  ;;  %v2379_v15 = vmax.f32 %v2115_v60, %v2315_v16  ;;  %v2706_v29 = vcombine.low %v4511_v51, %v4511_v51  ;;  %v2709_v12 = vcombine.high %v4340_v0, %v4340_v0 }
 0x34f   :  { %v2400_v43 = vmax.f32 %v2198_v45, %v2336_v32  ;;  %v2334_v34 = vmul.f32 0.01, %v2190_v5  ;;  %v2435_v48 = vpack.c.bf16 %v2382_v38, %v2381_v7  ;;  %v4517_v38 = vld [vmem:[#allocation10_spill] sm:$0xff]  ;;  %v4520_v7 = vld [vmem:[#allocation8_spill] sm:$0xff] }
 0x350   :  { %v4326_v42 = vpop.f32.mrf.mxu1  ;;  %2827 = vmatpush3.bf16.msra.mxu0 %v2429_v13  ;;  %v2378_v61 = vmax.f32 %v2110_v62, %v2314_v6  ;;  %v2434_v30 = vpack.c.bf16 %v2380_v14, %v2379_v15  ;;  %v4516_v13 = vld [vmem:[#allocation21_spill] sm:$0xff] }
 0x351   :  { %v4328_v17 = vpack.c.bf16 %v2400_v43, %v2399_v1  ;;  %v2398_v21 = vmax.f32 %v2190_v5, %v2334_v34  ;;  %2828 = vmatprep.subr.bf16.mxu0 %v2436_v28  ;;  %v4518_v43 = vld [vmem:[#allocation13_spill] sm:$0xff] }
 0x352   :  { %v2975_v63 = vpop.f32.mrf.mxu1  ;;  %v2433_v35 = vpack.c.bf16 %v2378_v61, %v2377_v52  ;;  %v4522_v15 = vld [vmem:[#allocation9_spill] sm:$0xff] }
 0x353   :  { %v4330_v47 = vpack.c.bf16 %v2398_v21, %v2397_v49  ;;  %v4521_v21 = vld [vmem:[#allocation12_spill] sm:$0xff] }
 0x354   :  { %v4332_v9 = vpop.f32.mrf.mxu1  ;;  %2829 = vmatpush3.bf16.msra.mxu0 %v4508_v24 }
 0x355   :  { %2830 = vmatprep.subr.bf16.mxu0 %v2435_v48 }
 0x356   :  { %v2978_v57 = vpop.f32.mrf.mxu1 }
 0x357   :  { %v2227_v32 = vadd.f32 %v2978_v57, %v4515_v50  ;;  %v4523_v57 = vld [vmem:[#allocation7_spill] sm:$0xff] }
 0x358   :  { %v2218_v41 = vpop.f32.mrf.mxu1  ;;  %2831 = vmatpush3.bf16.msra.mxu0 %v4509_v25  ;;  %v2214_v61 = vadd.f32 %v2975_v63, %v4523_v57 }
 0x359   :  { %2832 = vmatprep.subr.bf16.mxu0 %v2434_v30  ;;  %v2343_v36 = vmul.f32 0.01, %v2227_v32  ;;  %v2219_v49 = vadd.f32 %v2218_v41, %v4520_v7 }
 0x35a   :  { %v2979_v10 = vpop.f32.mrf.mxu1  ;;  %v2340_v63 = vmul.f32 0.01, %v2214_v61 }
 0x35b   :  { %v2230_v60 = vadd.f32 %v2979_v10, %v4513_v26  ;;  %v4524_v10 = vld [vmem:[#allocation18_spill] sm:$0xff] }
 0x35c   :  { %v2221_v46 = vpop.f32.mrf.mxu1  ;;  %2833 = vmatpush3.bf16.msra.mxu0 %v4510_v8 }
 0x35d   :  { %2834 = vmatprep.subr.bf16.mxu0 %v2433_v35  ;;  %v2344_v62 = vmul.f32 0.01, %v2230_v60  ;;  %v2222_v1 = vadd.f32 %v2221_v46, %v4517_v38 }
 0x35e   :  { %v4342_v2 = vpop.f32.mrf.mxu1 }
 0x35f   :  { %v2408_v30 = vmax.f32 %v2230_v60, %v2344_v62  ;;  %v2342_v25 = vmul.f32 0.01, %v2222_v1  ;;  %v4527_v60 = vld [vmem:[#allocation26_spill] sm:$0xff] }
 0x360   :  { %v4346_v19 = vpop.f32.mrf.mxu1  ;;  %2835 = vmatpush3.bf16.msra.mxu0 %v4512_v55  ;;  %v2407_v55 = vmax.f32 %v2227_v32, %v2343_v36 }
 0x362   :  { %v4351_v18 = vpop.f32.mrf.mxu1 }
 0x363   :  { %2512 = vmatmul.mubr.bf16.vlgmr.msra.gmra.mxu0 %v2706_v29  ;;  %v4525_v29 = vld [vmem:[#allocation15_spill] sm:$0xff] }
 0x364   :  { %v4353_v22 = vpop.f32.mrf.mxu1  ;;  %2551 = vmatprep.mubr.bf16.mxu0 %v2709_v12  ;;  %v2211_v41 = vadd.f32 %v4322_v4, %v4525_v29  ;;  %v2341_v12 = vmul.f32 0.01, %v2219_v49 }
 0x366   :  { %v2986_v54 = vpop.f32.mrf.mxu1  ;;  %v2339_v32 = vmul.f32 0.01, %v2211_v41 }
 0x368   :  { %v4355_v23 = vpop.f32.mrf.mxu1 }
 0x36a   :  { %v2987_v53 = vpop.f32.mrf.mxu1 }
 0x36c   :  { %v2253_v59 = vpop.f32.mrf.mxu1 }
 0x36e   :  { %v2990_v3 = vpop.f32.mrf.mxu1 }
 0x36f   :  { %v2275_v14 = vadd.f32 %v2990_v3, %v4521_v21 }
 0x370   :  { %v2266_v40 = vpop.f32.mrf.mxu1 }
 0x371   :  { %v2355_v3 = vmul.f32 0.01, %v2275_v14 }
 0x372   :  { %v2991_v45 = vpop.f32.mrf.mxu1 }
 0x373   :  { %v2278_v34 = vadd.f32 %v2991_v45, %v4518_v43  ;;  %v4526_v45 = vld [vmem:[#allocation16_spill] sm:$0xff] }
 0x374   :  { %v2269_v31 = vpop.f32.mrf.mxu1  ;;  %v2267_v26 = vadd.f32 %v2266_v40, %v4526_v45  ;;  %v2405_v40 = vmax.f32 %v2219_v49, %v2341_v12  ;;  %v4536_v45 = vld [vmem:[#allocation35_spill] sm:$0xff] }
 0x375   :  { %v2356_v52 = vmul.f32 0.01, %v2278_v34  ;;  %v2270_v35 = vadd.f32 %v2269_v31, %v4524_v10  ;;  %v2406_v31 = vmax.f32 %v2222_v1, %v2342_v25 }
 0x376   :  { %v2994_v11 = vpop.f32.mrf.mxu1  ;;  %v2353_v36 = vmul.f32 0.01, %v2267_v26 }
 0x377   :  { %v2291_v27 = vadd.f32 %v2994_v11, %v4514_v39  ;;  %v2420_v38 = vmax.f32 %v2278_v34, %v2356_v52  ;;  %v2354_v43 = vmul.f32 0.01, %v2270_v35  ;;  %v2447_v1 = vpack.c.bf16 %v2406_v31, %v2405_v40 }
 0x378   :  { %v2282_v5 = vpop.f32.mrf.mxu1  ;;  %v2417_v57 = vmax.f32 %v2267_v26, %v2353_v36  ;;  %v2235_v26 = vadd.f32 %v4346_v19, %v4536_v45  ;;  %v2708_v19 = vcombine.low %v4340_v0, %v4340_v0 }
 0x379   :  { %v2283_v44 = vadd.f32 %v2282_v5, %v4516_v13  ;;  %v2359_v16 = vmul.f32 0.01, %v2291_v27  ;;  %v2206_v5 = vadd.f32 %v4332_v9, %v4527_v60  ;;  %v2448_v13 = vpack.c.bf16 %v2408_v30, %v2407_v55  ;;  %v4533_v30 = vld [vmem:[#allocation32_spill] sm:$0xff] }
 0x37a   :  { %v2995_v28 = vpop.f32.mrf.mxu1  ;;  %v2404_v9 = vmax.f32 %v2214_v61, %v2340_v63  ;;  %v2246_v61 = vadd.f32 %v4351_v18, %v4533_v30  ;;  %v2345_v60 = vmul.f32 0.01, %v2235_v26 }
 0x37b   :  { %v2294_v37 = vadd.f32 %v2995_v28, %v4519_v20  ;;  %v2357_v48 = vmul.f32 0.01, %v2283_v44  ;;  %v2423_v46 = vmax.f32 %v2291_v27, %v2359_v16  ;;  %v4528_v27 = vld [vmem:[#allocation23_spill] sm:$0xff]  ;;  %v4529_v28 = vld [vmem:[#allocation22_spill] sm:$0xff]  ;;  %v2338_v7 = vmul.f32 0.01, %v2206_v5 }
 0x37c   :  { %v2285_v6 = vpop.f32.mrf.mxu1  ;;  %v2262_v62 = vadd.f32 %v2987_v53, %v4528_v27  ;;  %v2203_v16 = vadd.f32 %v4326_v42, %v4529_v28  ;;  %v4531_v53 = vld [vmem:[#allocation30_spill] sm:$0xff]  ;;  %v4532_v42 = vld [vmem:[#allocation31_spill] sm:$0xff] }
 0x37d   :  { %v2360_v24 = vmul.f32 0.01, %v2294_v37  ;;  %v2286_v33 = vadd.f32 %v2285_v6, %v4522_v15  ;;  %v2421_v11 = vmax.f32 %v2283_v44, %v2357_v48  ;;  %v4530_v44 = vld [vmem:[#allocation28_spill] sm:$0xff]  ;;  %v2254_v34 = vadd.f32 %v2253_v59, %v4531_v53 }
 0x37e   :  { %v2259_v20 = vadd.f32 %v2986_v54, %v4530_v44  ;;  %v2352_v21 = vmul.f32 0.01, %v2262_v62  ;;  %v2418_v6 = vmax.f32 %v2270_v35, %v2354_v43  ;;  %v2337_v15 = vmul.f32 0.01, %v2203_v16  ;;  %v4534_v35 = vld [vmem:[#allocation33_spill] sm:$0xff] }
 0x37f   :  { %v2424_v8 = vmax.f32 %v2294_v37, %v2360_v24  ;;  %v2358_v51 = vmul.f32 0.01, %v2286_v33  ;;  %v2419_v37 = vmax.f32 %v2275_v14, %v2355_v3  ;;  %v2403_v24 = vmax.f32 %v2211_v41, %v2339_v32  ;;  %v4535_v41 = vld [vmem:[#allocation34_spill] sm:$0xff]  ;;  %v2463_v32 = vpop.permute.xlu1 %2462 }
 0x380   :  { %v2251_v49 = vadd.f32 %v4355_v23, %v4532_v42  ;;  %v2402_v14 = vmax.f32 %v2206_v5, %v2338_v7  ;;  %v2416_v25 = vmax.f32 %v2262_v62, %v2352_v21  ;;  %v2350_v52 = vmul.f32 0.01, %v2254_v34 }
 0x381   :  { %v2422_v39 = vmax.f32 %v2286_v33, %v2358_v51  ;;  %v2456_v50 = vpack.c.bf16 %v2424_v8, %v2423_v46  ;;  %v2454_v48 = vpack.c.bf16 %v2420_v38, %v2419_v37  ;;  %v2351_v33 = vmul.f32 0.01, %v2259_v20 }
 0x382   :  { %v2446_v54 = vpack.c.bf16 %v2404_v9, %v2403_v24  ;;  %v2453_v10 = vpack.c.bf16 %v2418_v6, %v2417_v57  ;;  %v2401_v59 = vmax.f32 %v2203_v16, %v2337_v15  ;;  %v2243_v46 = vadd.f32 %v4342_v2, %v4534_v35 }
 0x383   :  { %2842 = vmatprep.subr.bf16.mxu0 %v2456_v50  ;;  %v2455_v4 = vpack.c.bf16 %v2422_v39, %v2421_v11  ;;  %v2415_v8 = vmax.f32 %v2259_v20, %v2351_v33  ;;  %v2349_v51 = vmul.f32 0.01, %v2251_v49  ;;  %v2348_v23 = vmul.f32 0.01, %v2246_v61 }
 0x384   :  { %2843 = vmatpush3.bf16.msra.mxu0 %v2448_v13  ;;  %v2445_v29 = vpack.c.bf16 %v2402_v14, %v2401_v59  ;;  %v2238_v55 = vadd.f32 %v4353_v22, %v4535_v41  ;;  %v2414_v12 = vmax.f32 %v2254_v34, %v2350_v52  ;;  %v2347_v18 = vmul.f32 0.01, %v2243_v46 }
 0x385   :  { %2844 = vmatprep.subr.bf16.mxu0 %v2455_v4  ;;  %v2452_v3 = vpack.c.bf16 %v2416_v25, %v2415_v8  ;;  %v2413_v11 = vmax.f32 %v2251_v49, %v2349_v51  ;;  %v2412_v39 = vmax.f32 %v2246_v61, %v2348_v23  ;;  %v2409_v22 = vmax.f32 %v2235_v26, %v2345_v60 }
 0x386   :  { %v2346_v50 = vmul.f32 0.01, %v2238_v55  ;;  %v2411_v63 = vmax.f32 %v2243_v46, %v2347_v18 }
 0x387   :  { %v2451_v2 = vpack.c.bf16 %v2414_v12, %v2413_v11 }
 0x388   :  { %2845 = vmatpush3.bf16.msra.mxu0 %v2447_v1  ;;  %v2410_v5 = vmax.f32 %v2238_v55, %v2346_v50  ;;  %v2450_v13 = vpack.c.bf16 %v2412_v39, %v2411_v63 }
 0x389   :  { %2846 = vmatprep.subr.bf16.mxu0 %v2454_v48 }
 0x38a   :  { %v2449_v31 = vpack.c.bf16 %v2410_v5, %v2409_v22 }
 0x38c   :  { %2847 = vmatpush3.bf16.msra.mxu0 %v2446_v54 }
 0x38d   :  { %2848 = vmatprep.subr.bf16.mxu0 %v2453_v10 }
 0x390   :  { %2849 = vmatpush3.bf16.msra.mxu0 %v2445_v29 }
 0x391   :  { %2850 = vmatprep.subr.bf16.mxu0 %v2452_v3 }
 0x394   :  { %2851 = vmatpush3.bf16.msra.mxu0 %v4328_v17 }
 0x395   :  { %2852 = vmatprep.subr.bf16.mxu0 %v2451_v2 }
 0x398   :  { %2853 = vmatpush3.bf16.msra.mxu0 %v4330_v47 }
 0x399   :  { %2854 = vmatprep.subr.bf16.mxu0 %v2450_v13 }
 0x39c   :  { %2855 = vmatpush3.bf16.msra.mxu0 %v4305_v58 }
 0x39d   :  { %2856 = vmatprep.subr.bf16.mxu0 %v2449_v31 }
 0x3a0   :  { %2857 = vmatpush3.bf16.msra.mxu0 %v4312_v56 }
 0x3a3   :  { %2552 = vmatmul.mubr.bf16.vlgmr.msra.gmra.mxu0 %v2708_v19 }
 0x423   :  { %v2836_v17 = vpop.f32.mrf.mxu0 }
 0x425   :  { %v2837_v27 = vpop.f32.mrf.mxu0 }
 0x426   :  { %v2838_v43 = vadd.f32 %v2837_v27, %v2836_v17 }
 0x427   :  { %v2839_v62 = vpop.f32.mrf.mxu0 }
 0x428   :  { %v2514_v28 = vadd.f32 %v2838_v43, %v2463_v32 }
 0x429   :  { %v2840_v38 = vpop.f32.mrf.mxu0 }
 0x463   :  { %v2858_v4 = vpop.f32.mrf.mxu0 }
 0x465   :  { %v2859_v47 = vpop.f32.mrf.mxu0 }
 0x466   :  { %v2860_v16 = vadd.f32 %v2859_v47, %v2858_v4 }
 0x467   :  { %v2861_v58 = vpop.f32.mrf.mxu0 }
 0x468   :  { %v2554_v40 = vadd.f32 %v2860_v16, %v2514_v28 }
 0x469   :  { %v2862_v44 = vpop.f32.mrf.mxu0 }
 0x46a   :  { %2559 = vst [vmem:[#allocation2] sm:$0xf] %v2554_v40 }
 0x46b   :  { %3085 = shalt.err (!%p3082_p4)
}
 0x46c   :  { %2569 = dma.vmem_to_hbm [thread:$0]  %s2567_s20, 64, %s4407_s9, [#allocation3]  }
 0x46d   :  { %3094 = dma.done.wait [#allocation3], 64  }
 0x46e   :  { %3095 = vsyncadd [#allocation3], 4294967232 }
 0x46f   :  { %2573 = vsyncpa [#allocation3], 1 }

</bundles_post_ra>
